<compile_context>
chip_gen: v6e
topology: v6e:2x2x1
jax: 0.10.0
libtpu: 0.0.40
codegen_flags: <defaults>
</compile_context>

<pallas_src>
import jax
import jax.numpy as jnp
from jax import lax
from jax.experimental import pallas as pl
from jax.experimental.pallas import tpu as pltpu
import numpy as np

NUM_CLASSES = 1
INPUT_SIZE = 18
HIDDEN_SIZE = 32     # small stand-in for the production 512
NUM_LAYERS = 4
BATCH = 2
SEQ = 8

_B_PAD = 8           # pad batch to the f32 sublane tile
_C_PAD = 128         # pad fc output width so the final store is lane-dense


def _sigmoid(x):
    # sigmoid(x) = 0.5*(1 + tanh(x/2)) -> one EUP op per element instead of
    # exp + reciprocal; shortens the serial per-step dependent chain.
    return 0.5 * (jnp.tanh(0.5 * x) + 1.0)


# --------------------------------------------------------------------------
# Fused Pallas kernel: one grid step == one LSTM layer, fc fused per layer
# --------------------------------------------------------------------------
def _fused_lstm_fc_kernel(x_ref, wih0_ref, wihn_ref, whh_ref, b_ref,
                          wfc_ref, bfc_ref, out_ref, xg_ref):
    """
    x_ref    : (seq, B_PAD, H)   f32  layer-0 input (feature-padded to H)
    wih0_ref : (H, 4H)           bf16 layer-0 W_ih^T (row-padded, gate-permuted)
    wihn_ref : (1, H, 4H)        bf16 NEXT layer's W_ih^T (zeros on last layer)
    whh_ref  : (1, H, 4H)        bf16 this layer's W_hh^T
    b_ref    : (1, 1, 4H)        f32  b_ih + b_hh (gate-permuted)
    wfc_ref  : (H, C_PAD)        f32  fc weight^T (columns zero-padded)
    bfc_ref  : (1, C_PAD)        f32  fc bias (zero-padded)
    out_ref  : (B_PAD, C_PAD)    f32  fc(h_last) of this layer
    xg_ref   : (seq, B_PAD, 4H)  f32  scratch: per-timestep input projections
                                       (written by the previous layer's
                                       recurrence; layer 0 fills it with one
                                       big matmul), overwritten in place with
                                       this layer's projections for layer l+1.
    """
    layer = pl.program_id(0)
    seq, bp, g4 = xg_ref.shape
    H = g4 // 4

    # Layer 0 only: whole-sequence input projection straight from the padded
    # input (no VMEM->VMEM staging copy). Layers > 0 find their projections
    # already resident in xg_ref.
    @pl.when(layer == 0)
    def _():
        x_all = x_ref[...].reshape(seq * bp, H).astype(jnp.bfloat16)
        xg_ref[...] = jnp.dot(
            x_all, wih0_ref[...],
            preferred_element_type=jnp.float32).reshape(seq, bp, g4)

    w_hh = whh_ref[0]          # (H, 4H) bf16, loop-invariant
    w_ih_next = wihn_ref[0]    # (H, 4H) bf16, next layer's input weights
    # Hoist the bias broadcast out of the loop (JAX does not CSE broadcasts).
    bias = jnp.broadcast_to(b_ref[0], (bp, g4))

    def step(t, carry):
        h, c = carry           # f32 (B_PAD, H)
        gates = xg_ref[t] + bias + jnp.dot(
            h.astype(jnp.bfloat16), w_hh, preferred_element_type=jnp.float32)
        # Gate columns are wrapper-permuted to [i | f | o | g]: one contiguous
        # sigmoid over 3H + one tanh over H (2 EUP calls instead of 4).
        sfo = _sigmoid(gates[:, :3 * H])
        g = jnp.tanh(gates[:, 3 * H:])
        i_g = sfo[:, 0 * H:1 * H]
        f_g = sfo[:, 1 * H:2 * H]
        o_g = sfo[:, 2 * H:3 * H]
        c_new = f_g * c + i_g * g
        h_new = o_g * jnp.tanh(c_new)
        # Overlapped next-layer input projection: xg[t] was consumed above, so
        # overwrite it in place with h_new @ W_ih^{l+1}. This keeps the big
        # inter-layer projection off the critical path (it is not on the
        # recurrence's dependent chain). Zero weights on the last layer make
        # the final-layer writes a harmless no-op.
        xg_ref[t] = jnp.dot(h_new.astype(jnp.bfloat16), w_ih_next,
                            preferred_element_type=jnp.float32)
        return h_new, c_new

    h0 = jnp.zeros((bp, H), jnp.float32)
    c0 = jnp.zeros((bp, H), jnp.float32)
    # Partial unroll keeps LLO scheduling visibility without blowing the
    # 64-vreg file at production H.
    h_fin, _ = lax.fori_loop(0, seq, step, (h0, c0), unroll=min(8, seq))

    # Fused fc for this layer's final hidden state (lane-dense 128-wide store,
    # one output block per layer -> each block written exactly once).
    out_ref[...] = (jnp.dot(h_fin, wfc_ref[...],
                            preferred_element_type=jnp.float32)
                    + bfc_ref[...])


# --------------------------------------------------------------------------
# Wrapper
# --------------------------------------------------------------------------
def lstm_model_forward(x, params):
    """x: (batch, seq, input_size) f32 -> (num_layers*batch, num_classes).

    Matches the PyTorch module forward in eval mode:
      ula, (h_out, _) = lstm(x, (zeros, zeros))
      out = fc(h_out.view(-1, hidden_size))
      out = dropout(out)          # identity at inference
    """
    batch, seq, in_dim = x.shape
    H, L, G4 = HIDDEN_SIZE, NUM_LAYERS, 4 * HIDDEN_SIZE
    assert in_dim <= H, "feature padding assumes input_size <= hidden_size"
    bp = max(_B_PAD, -(-batch // 8) * 8)

    # (batch, seq, in) -> (seq, bp, H), zero-padded. Padded batch rows evolve
    # independently and are discarded below.
    x_t = jnp.transpose(x, (1, 0, 2)).astype(jnp.float32)
    x_pad = jnp.zeros((seq, bp, H), jnp.float32).at[:, :batch, :in_dim].set(x_t)

    # Gate-order permutation: PyTorch rows (i, f, g, o) -> kernel (i, f, o, g)
    # so sigmoid gets one contiguous 3H slice and tanh one H slice.
    perm = np.concatenate([np.arange(0, H), np.arange(H, 2 * H),
                           np.arange(3 * H, 4 * H), np.arange(2 * H, 3 * H)])

    wih_l, whh_l, b_l = [], [], []
    for l in range(L):
        w_ih, w_hh, b_ih, b_hh = params["lstm"][l]
        w_ih_p = jnp.asarray(w_ih, jnp.float32)[perm]            # (4H, in)
        w_hh_p = jnp.asarray(w_hh, jnp.float32)[perm]            # (4H, H)
        b_p = jnp.asarray(b_ih + b_hh, jnp.float32)[perm]        # (4H,)
        w_ih_t = jnp.zeros((H, G4), jnp.float32).at[:w_ih.shape[1], :].set(
            w_ih_p.T)
        wih_l.append(w_ih_t)
        whh_l.append(w_hh_p.T)
        b_l.append(b_p.reshape(1, G4))

    wih0 = wih_l[0].astype(jnp.bfloat16)                          # (H, 4H)
    # W_ih for layer l+1 (consumed inside layer l's recurrence); last entry is
    # zeros so the final layer's overlapped projection is a no-op.
    wihn_all = jnp.stack(
        wih_l[1:] + [jnp.zeros((H, G4), jnp.float32)]).astype(jnp.bfloat16)
    whh_all = jnp.stack(whh_l).astype(jnp.bfloat16)               # (L, H, 4H)
    b_all = jnp.stack(b_l)                                        # (L, 1, 4H)

    wfc = jnp.zeros((H, _C_PAD), jnp.float32).at[:, :NUM_CLASSES].set(
        jnp.asarray(params["fc_w"].T, jnp.float32))
    bfc = jnp.zeros((1, _C_PAD), jnp.float32).at[:, :NUM_CLASSES].set(
        jnp.asarray(params["fc_b"].reshape(1, NUM_CLASSES), jnp.float32))

    # Advisory cost estimate so XLA schedules sensibly around the fused call.
    flops = (2 * seq * bp * H * G4                 # layer-0 projection
             + L * seq * 2 * (2 * bp * H * G4)     # per-step W_hh + next proj
             + L * 2 * bp * H * _C_PAD)            # fc epilogue
    transcendentals = L * seq * bp * 5 * H         # 3H sigmoid + 2H tanh /step
    bytes_accessed = (seq * bp * H * 4 + H * G4 * 2 + 2 * L * H * G4 * 2
                      + L * G4 * 4 + H * _C_PAD * 4 + _C_PAD * 4
                      + L * bp * _C_PAD * 4)
    cost = pl.CostEstimate(flops=flops, transcendentals=transcendentals,
                           bytes_accessed=bytes_accessed)

    grid_spec = pltpu.PrefetchScalarGridSpec(
        num_scalar_prefetch=0,
        grid=(L,),                                             # layer index
        in_specs=[
            pl.BlockSpec((seq, bp, H), lambda l: (0, 0, 0)),   # x (layer 0)
            pl.BlockSpec((H, G4), lambda l: (0, 0)),           # W_ih^0
            pl.BlockSpec((1, H, G4), lambda l: (l, 0, 0)),     # W_ih^{l+1}
            pl.BlockSpec((1, H, G4), lambda l: (l, 0, 0)),     # W_hh^l
            pl.BlockSpec((1, 1, G4), lambda l: (l, 0, 0)),     # bias^l
            pl.BlockSpec((H, _C_PAD), lambda l: (0, 0)),       # fc weight
            pl.BlockSpec((1, _C_PAD), lambda l: (0, 0)),       # fc bias
        ],
        out_specs=pl.BlockSpec((bp, _C_PAD), lambda l: (l, 0)),
        scratch_shapes=[
            # Per-timestep input projections, shared across layers. f32 here
            # for exact parity with the reference; at production seq/H store
            # bf16 (add in f32 at use) to halve the dominant VMEM consumer.
            pltpu.VMEM((seq, bp, G4), jnp.float32),
        ],
    )
    out_full = pl.pallas_call(
        _fused_lstm_fc_kernel,
        out_shape=jax.ShapeDtypeStruct((L * bp, _C_PAD), jnp.float32),
        grid_spec=grid_spec,
        compiler_params=pltpu.CompilerParams(
            dimension_semantics=("arbitrary",),     # layer l depends on l-1
            vmem_limit_bytes=32 * 1024 * 1024),
        cost_estimate=cost,
    )(x_pad, wih0, wihn_all, whh_all, b_all, wfc, bfc)

    out = out_full.reshape(L, bp, _C_PAD)[:, :batch, :NUM_CLASSES]
    # TODO(synk): nn.LSTM inter-layer dropout (p=0.25) and nn.Dropout(p=0.2)
    # after fc are training-only; identity here (inference semantics).
    return out.reshape(L * batch, NUM_CLASSES)


# --------------------------------------------------------------------------
# Plain-JAX reference (emulates the kernel's bf16 matmul inputs, f32 accum,
# tanh-based sigmoid) in the original PyTorch gate order.
# --------------------------------------------------------------------------
def lstm_model_ref(x, params):
    def q(a):  # bf16 round-trip, matching what the kernel feeds the MXU
        return a.astype(jnp.bfloat16).astype(jnp.float32)

    batch, seq, _ = x.shape
    H = HIDDEN_SIZE
    layer_in = jnp.transpose(x, (1, 0, 2)).astype(jnp.float32)
    h_lasts = []
    for l in range(NUM_LAYERS):
        w_ih, w_hh, b_ih, b_hh = params["lstm"][l]
        wih_q, whh_q = q(w_ih), q(w_hh)
        b = b_ih + b_hh
        h = jnp.zeros((batch, H), jnp.float32)
        c = jnp.zeros((batch, H), jnp.float32)
        outs = []
        for t in range(seq):
            g = q(layer_in[t]) @ wih_q.T + b + q(h) @ whh_q.T
            i = _sigmoid(g[:, 0 * H:1 * H])
            f = _sigmoid(g[:, 1 * H:2 * H])
            gg = jnp.tanh(g[:, 2 * H:3 * H])
            o = _sigmoid(g[:, 3 * H:4 * H])
            c = f * c + i * gg
            h = o * jnp.tanh(c)
            outs.append(h)
        layer_in = jnp.stack(outs, axis=0)
        h_lasts.append(h)
    h_out = jnp.stack(h_lasts, axis=0).reshape(-1, H)
    return h_out @ params["fc_w"].T + params["fc_b"]


# --------------------------------------------------------------------------
# Parameter init (deterministic, mimics PyTorch uniform(-1/sqrt(H), 1/sqrt(H)))
# --------------------------------------------------------------------------
def init_params(key):
    H = HIDDEN_SIZE
    bound = 1.0 / np.sqrt(H)
    params = {"lstm": []}
    for l in range(NUM_LAYERS):
        in_dim = INPUT_SIZE if l == 0 else H
        key, k1, k2, k3, k4 = jax.random.split(key, 5)
        w_ih = jax.random.uniform(k1, (4 * H, in_dim), jnp.float32, -bound, bound)
        w_hh = jax.random.uniform(k2, (4 * H, H), jnp.float32, -bound, bound)
        b_ih = jax.random.uniform(k3, (4 * H,), jnp.float32, -bound, bound)
        b_hh = jax.random.uniform(k4, (4 * H,), jnp.float32, -bound, bound)
        params["lstm"].append((w_ih, w_hh, b_ih, b_hh))
    key, k5, k6 = jax.random.split(key, 3)
    params["fc_w"] = jax.random.uniform(k5, (NUM_CLASSES, H), jnp.float32,
                                        -bound, bound)
    params["fc_b"] = jax.random.uniform(k6, (NUM_CLASSES,), jnp.float32,
                                        -bound, bound)
    return params


if __name__ == "__main__":
    key = jax.random.PRNGKey(0)
    key, kx, kp = jax.random.split(key, 3)
    x = jax.random.normal(kx, (BATCH, SEQ, INPUT_SIZE), jnp.float32)
    params = init_params(kp)

    fwd = jax.jit(lstm_model_forward)
    out = jax.block_until_ready(fwd(x, params))

    ref = lstm_model_ref(x, params)
    assert out.shape == (NUM_LAYERS * BATCH, NUM_CLASSES), out.shape
    np.testing.assert_allclose(np.asarray(out), np.asarray(ref),
                               rtol=5e-3, atol=5e-3)
    print("KERNEL_OK")
</pallas_src>

<mosaic_0001>
module attributes {stable_mosaic.version = 11 : i64} {
  func.func @_fused_lstm_fc_kernel(%arg0: i32, %arg1: memref<8x8x32xf32, #tpu.memory_space<vmem>>, %arg2: memref<32x128xbf16, #tpu.memory_space<vmem>>, %arg3: memref<1x32x128xbf16, #tpu.memory_space<vmem>>, %arg4: memref<1x32x128xbf16, #tpu.memory_space<vmem>>, %arg5: memref<1x1x128xf32, #tpu.memory_space<vmem>>, %arg6: memref<32x128xf32, #tpu.memory_space<vmem>>, %arg7: memref<1x128xf32, #tpu.memory_space<vmem>>, %arg8: memref<8x128xf32, #tpu.memory_space<vmem>>, %arg9: memref<8x8x128xf32, #tpu.memory_space<vmem>>) attributes {dimension_semantics = [#tpu.dimension_semantics<arbitrary>], iteration_bounds = array<i64: 4>, scalar_prefetch = 0 : i64, scratch_operands = 1 : i64, tpu.core_type = #tpu.core_type<tc>, window_params = [{pipeline_mode = #tpu.pipeline_mode<synchronous>, transform_indices = @transform_0, window_bounds = array<i64: 8, 8, 32>}, {pipeline_mode = #tpu.pipeline_mode<synchronous>, transform_indices = @transform_1, window_bounds = array<i64: 32, 128>}, {transform_indices = @transform_2, window_bounds = array<i64: 1, 32, 128>}, {transform_indices = @transform_3, window_bounds = array<i64: 1, 32, 128>}, {transform_indices = @transform_4, window_bounds = array<i64: 1, 1, 128>}, {pipeline_mode = #tpu.pipeline_mode<synchronous>, transform_indices = @transform_5, window_bounds = array<i64: 32, 128>}, {pipeline_mode = #tpu.pipeline_mode<synchronous>, transform_indices = @transform_6, window_bounds = array<i64: 1, 128>}, {transform_indices = @transform_7, window_bounds = array<i64: 8, 128>}]} {
    %c0_i32 = arith.constant 0 : i32
    %0 = arith.cmpi eq, %arg0, %c0_i32 : i32
    %1 = arith.extui %0 : i1 to i32
    %c0_i32_0 = arith.constant 0 : i32
    %2 = arith.cmpi ne, %1, %c0_i32_0 : i32
    scf.if %2 {
      %c0_90 = arith.constant 0 : index
      %c0_91 = arith.constant 0 : index
      %c0_92 = arith.constant 0 : index
      %267 = vector.load %arg1[%c0_90, %c0_91, %c0_92] : memref<8x8x32xf32, #tpu.memory_space<vmem>>, vector<8x8x32xf32>
      %268 = vector.shape_cast %267 : vector<8x8x32xf32> to vector<64x32xf32>
      %269 = arith.truncf %268 : vector<64x32xf32> to vector<64x32xbf16>
      %c0_93 = arith.constant 0 : index
      %c0_94 = arith.constant 0 : index
      %270 = vector.load %arg2[%c0_93, %c0_94] : memref<32x128xbf16, #tpu.memory_space<vmem>>, vector<32x128xbf16>
      %cst_95 = arith.constant dense<0.000000e+00> : vector<64x128xf32>
      %271 = tpu.matmul %269, %270, %cst_95 {dimension_numbers = #tpu.dot_dimension_numbers<[1], [0], [0], [1], [0, 0, 1, 1], [], []>} : vector<64x32xbf16>, vector<32x128xbf16>, vector<64x128xf32> -> vector<64x128xf32>
      %272 = vector.shape_cast %271 : vector<64x128xf32> to vector<8x8x128xf32>
      %c0_96 = arith.constant 0 : index
      %c0_97 = arith.constant 0 : index
      %c0_98 = arith.constant 0 : index
      %273 = vector.load %arg9[%c0_96, %c0_97, %c0_98] : memref<8x8x128xf32, #tpu.memory_space<vmem>>, vector<8x8x128xf32>
      tpu.vector_store %arg9[%c0_96, %c0_97, %c0_98], %272 {strides = array<i32>} : memref<8x8x128xf32, #tpu.memory_space<vmem>>, vector<8x8x128xf32>,
    } else {
    }
    %c0 = arith.constant 0 : index
    %c0_1 = arith.constant 0 : index
    %c0_2 = arith.constant 0 : index
    %3 = vector.load %arg4[%c0, %c0_1, %c0_2] : memref<1x32x128xbf16, #tpu.memory_space<vmem>>, vector<1x32x128xbf16>
    %4 = vector.shape_cast %3 : vector<1x32x128xbf16> to vector<32x128xbf16>
    %c0_3 = arith.constant 0 : index
    %c0_4 = arith.constant 0 : index
    %c0_5 = arith.constant 0 : index
    %5 = vector.load %arg3[%c0_3, %c0_4, %c0_5] : memref<1x32x128xbf16, #tpu.memory_space<vmem>>, vector<1x32x128xbf16>
    %6 = vector.shape_cast %5 : vector<1x32x128xbf16> to vector<32x128xbf16>
    %c0_6 = arith.constant 0 : index
    %c0_7 = arith.constant 0 : index
    %c0_8 = arith.constant 0 : index
    %7 = vector.load %arg5[%c0_6, %c0_7, %c0_8] : memref<1x1x128xf32, #tpu.memory_space<vmem>>, vector<1x1x128xf32>
    %8 = vector.shape_cast %7 : vector<1x1x128xf32> to vector<1x128xf32>
    %9 = vector.shape_cast %8 : vector<1x128xf32> to vector<1x128xf32>
    %10 = vector.broadcast %9 : vector<1x128xf32> to vector<8x128xf32>
    %cst = arith.constant 0.000000e+00 : f32
    %11 = vector.broadcast %cst : f32 to vector<8x32xf32>
    %cst_9 = arith.constant 0.000000e+00 : f32
    %12 = vector.broadcast %cst_9 : f32 to vector<8x32xf32>
    %c0_i32_10 = arith.constant 0 : i32
    %13 = arith.index_cast %c0_i32_10 : i32 to index
    %c0_11 = arith.constant 0 : index
    %c0_12 = arith.constant 0 : index
    %14 = vector.load %arg9[%13, %c0_11, %c0_12] : memref<8x8x128xf32, #tpu.memory_space<vmem>>, vector<1x8x128xf32>
    %15 = vector.shape_cast %14 : vector<1x8x128xf32> to vector<8x128xf32>
    %16 = arith.addf %15, %10 : vector<8x128xf32>
    %17 = arith.truncf %11 : vector<8x32xf32> to vector<8x32xbf16>
    %cst_13 = arith.constant dense<0.000000e+00> : vector<8x128xf32>
    %18 = tpu.matmul %17, %4, %cst_13 {dimension_numbers = #tpu.dot_dimension_numbers<[1], [0], [0], [1], [0, 0, 1, 1], [], []>} : vector<8x32xbf16>, vector<32x128xbf16>, vector<8x128xf32> -> vector<8x128xf32>
    %19 = arith.addf %16, %18 : vector<8x128xf32>
    %20 = vector.extract_strided_slice %19 {offsets = [0, 0], sizes = [8, 96], strides = [1, 1]} : vector<8x128xf32> to vector<8x96xf32>
    %cst_14 = arith.constant 5.000000e-01 : f32
    %21 = vector.broadcast %cst_14 : f32 to vector<8x96xf32>
    %22 = arith.mulf %21, %20 : vector<8x96xf32>
    %23 = math.tanh %22 : vector<8x96xf32>
    %cst_15 = arith.constant 1.000000e+00 : f32
    %24 = vector.broadcast %cst_15 : f32 to vector<8x96xf32>
    %25 = arith.addf %23, %24 : vector<8x96xf32>
    %cst_16 = arith.constant 5.000000e-01 : f32
    %26 = vector.broadcast %cst_16 : f32 to vector<8x96xf32>
    %27 = arith.mulf %26, %25 : vector<8x96xf32>
    %28 = vector.extract_strided_slice %19 {offsets = [0, 96], sizes = [8, 32], strides = [1, 1]} : vector<8x128xf32> to vector<8x32xf32>
    %29 = math.tanh %28 : vector<8x32xf32>
    %30 = vector.extract_strided_slice %27 {offsets = [0, 0], sizes = [8, 32], strides = [1, 1]} : vector<8x96xf32> to vector<8x32xf32>
    %31 = vector.extract_strided_slice %27 {offsets = [0, 32], sizes = [8, 32], strides = [1, 1]} : vector<8x96xf32> to vector<8x32xf32>
    %32 = vector.extract_strided_slice %27 {offsets = [0, 64], sizes = [8, 32], strides = [1, 1]} : vector<8x96xf32> to vector<8x32xf32>
    %33 = arith.mulf %31, %12 : vector<8x32xf32>
    %34 = arith.mulf %30, %29 : vector<8x32xf32>
    %35 = arith.addf %33, %34 : vector<8x32xf32>
    %36 = math.tanh %35 : vector<8x32xf32>
    %37 = arith.mulf %32, %36 : vector<8x32xf32>
    %38 = arith.truncf %37 : vector<8x32xf32> to vector<8x32xbf16>
    %cst_17 = arith.constant dense<0.000000e+00> : vector<8x128xf32>
    %39 = tpu.matmul %38, %6, %cst_17 {dimension_numbers = #tpu.dot_dimension_numbers<[1], [0], [0], [1], [0, 0, 1, 1], [], []>} : vector<8x32xbf16>, vector<32x128xbf16>, vector<8x128xf32> -> vector<8x128xf32>
    %40 = arith.index_cast %c0_i32_10 : i32 to index
    %c0_18 = arith.constant 0 : index
    %c0_19 = arith.constant 0 : index
    %41 = vector.load %arg9[%40, %c0_18, %c0_19] : memref<8x8x128xf32, #tpu.memory_space<vmem>>, vector<1x8x128xf32>
    %42 = vector.shape_cast %41 : vector<1x8x128xf32> to vector<8x128xf32>
    %43 = vector.shape_cast %39 : vector<8x128xf32> to vector<1x8x128xf32>
    tpu.vector_store %arg9[%40, %c0_18, %c0_19], %43 {strides = array<i32>} : memref<8x8x128xf32, #tpu.memory_space<vmem>>, vector<1x8x128xf32>,
    %c1_i32 = arith.constant 1 : i32
    %44 = arith.index_cast %c1_i32 : i32 to index
    %c0_20 = arith.constant 0 : index
    %c0_21 = arith.constant 0 : index
    %45 = vector.load %arg9[%44, %c0_20, %c0_21] : memref<8x8x128xf32, #tpu.memory_space<vmem>>, vector<1x8x128xf32>
    %46 = vector.shape_cast %45 : vector<1x8x128xf32> to vector<8x128xf32>
    %47 = arith.addf %46, %10 : vector<8x128xf32>
    %48 = arith.truncf %37 : vector<8x32xf32> to vector<8x32xbf16>
    %cst_22 = arith.constant dense<0.000000e+00> : vector<8x128xf32>
    %49 = tpu.matmul %48, %4, %cst_22 {dimension_numbers = #tpu.dot_dimension_numbers<[1], [0], [0], [1], [0, 0, 1, 1], [], []>} : vector<8x32xbf16>, vector<32x128xbf16>, vector<8x128xf32> -> vector<8x128xf32>
    %50 = arith.addf %47, %49 : vector<8x128xf32>
    %51 = vector.extract_strided_slice %50 {offsets = [0, 0], sizes = [8, 96], strides = [1, 1]} : vector<8x128xf32> to vector<8x96xf32>
    %cst_23 = arith.constant 5.000000e-01 : f32
    %52 = vector.broadcast %cst_23 : f32 to vector<8x96xf32>
    %53 = arith.mulf %52, %51 : vector<8x96xf32>
    %54 = math.tanh %53 : vector<8x96xf32>
    %cst_24 = arith.constant 1.000000e+00 : f32
    %55 = vector.broadcast %cst_24 : f32 to vector<8x96xf32>
    %56 = arith.addf %54, %55 : vector<8x96xf32>
    %cst_25 = arith.constant 5.000000e-01 : f32
    %57 = vector.broadcast %cst_25 : f32 to vector<8x96xf32>
    %58 = arith.mulf %57, %56 : vector<8x96xf32>
    %59 = vector.extract_strided_slice %50 {offsets = [0, 96], sizes = [8, 32], strides = [1, 1]} : vector<8x128xf32> to vector<8x32xf32>
    %60 = math.tanh %59 : vector<8x32xf32>
    %61 = vector.extract_strided_slice %58 {offsets = [0, 0], sizes = [8, 32], strides = [1, 1]} : vector<8x96xf32> to vector<8x32xf32>
    %62 = vector.extract_strided_slice %58 {offsets = [0, 32], sizes = [8, 32], strides = [1, 1]} : vector<8x96xf32> to vector<8x32xf32>
    %63 = vector.extract_strided_slice %58 {offsets = [0, 64], sizes = [8, 32], strides = [1, 1]} : vector<8x96xf32> to vector<8x32xf32>
    %64 = arith.mulf %62, %35 : vector<8x32xf32>
    %65 = arith.mulf %61, %60 : vector<8x32xf32>
    %66 = arith.addf %64, %65 : vector<8x32xf32>
    %67 = math.tanh %66 : vector<8x32xf32>
    %68 = arith.mulf %63, %67 : vector<8x32xf32>
    %69 = arith.truncf %68 : vector<8x32xf32> to vector<8x32xbf16>
    %cst_26 = arith.constant dense<0.000000e+00> : vector<8x128xf32>
    %70 = tpu.matmul %69, %6, %cst_26 {dimension_numbers = #tpu.dot_dimension_numbers<[1], [0], [0], [1], [0, 0, 1, 1], [], []>} : vector<8x32xbf16>, vector<32x128xbf16>, vector<8x128xf32> -> vector<8x128xf32>
    %71 = arith.index_cast %c1_i32 : i32 to index
    %c0_27 = arith.constant 0 : index
    %c0_28 = arith.constant 0 : index
    %72 = vector.load %arg9[%71, %c0_27, %c0_28] : memref<8x8x128xf32, #tpu.memory_space<vmem>>, vector<1x8x128xf32>
    %73 = vector.shape_cast %72 : vector<1x8x128xf32> to vector<8x128xf32>
    %74 = vector.shape_cast %70 : vector<8x128xf32> to vector<1x8x128xf32>
    tpu.vector_store %arg9[%71, %c0_27, %c0_28], %74 {strides = array<i32>} : memref<8x8x128xf32, #tpu.memory_space<vmem>>, vector<1x8x128xf32>,
    %c2_i32 = arith.constant 2 : i32
    %75 = arith.index_cast %c2_i32 : i32 to index
    %c0_29 = arith.constant 0 : index
    %c0_30 = arith.constant 0 : index
    %76 = vector.load %arg9[%75, %c0_29, %c0_30] : memref<8x8x128xf32, #tpu.memory_space<vmem>>, vector<1x8x128xf32>
    %77 = vector.shape_cast %76 : vector<1x8x128xf32> to vector<8x128xf32>
    %78 = arith.addf %77, %10 : vector<8x128xf32>
    %79 = arith.truncf %68 : vector<8x32xf32> to vector<8x32xbf16>
    %cst_31 = arith.constant dense<0.000000e+00> : vector<8x128xf32>
    %80 = tpu.matmul %79, %4, %cst_31 {dimension_numbers = #tpu.dot_dimension_numbers<[1], [0], [0], [1], [0, 0, 1, 1], [], []>} : vector<8x32xbf16>, vector<32x128xbf16>, vector<8x128xf32> -> vector<8x128xf32>
    %81 = arith.addf %78, %80 : vector<8x128xf32>
    %82 = vector.extract_strided_slice %81 {offsets = [0, 0], sizes = [8, 96], strides = [1, 1]} : vector<8x128xf32> to vector<8x96xf32>
    %cst_32 = arith.constant 5.000000e-01 : f32
    %83 = vector.broadcast %cst_32 : f32 to vector<8x96xf32>
    %84 = arith.mulf %83, %82 : vector<8x96xf32>
    %85 = math.tanh %84 : vector<8x96xf32>
    %cst_33 = arith.constant 1.000000e+00 : f32
    %86 = vector.broadcast %cst_33 : f32 to vector<8x96xf32>
    %87 = arith.addf %85, %86 : vector<8x96xf32>
    %cst_34 = arith.constant 5.000000e-01 : f32
    %88 = vector.broadcast %cst_34 : f32 to vector<8x96xf32>
    %89 = arith.mulf %88, %87 : vector<8x96xf32>
    %90 = vector.extract_strided_slice %81 {offsets = [0, 96], sizes = [8, 32], strides = [1, 1]} : vector<8x128xf32> to vector<8x32xf32>
    %91 = math.tanh %90 : vector<8x32xf32>
    %92 = vector.extract_strided_slice %89 {offsets = [0, 0], sizes = [8, 32], strides = [1, 1]} : vector<8x96xf32> to vector<8x32xf32>
    %93 = vector.extract_strided_slice %89 {offsets = [0, 32], sizes = [8, 32], strides = [1, 1]} : vector<8x96xf32> to vector<8x32xf32>
    %94 = vector.extract_strided_slice %89 {offsets = [0, 64], sizes = [8, 32], strides = [1, 1]} : vector<8x96xf32> to vector<8x32xf32>
    %95 = arith.mulf %93, %66 : vector<8x32xf32>
    %96 = arith.mulf %92, %91 : vector<8x32xf32>
    %97 = arith.addf %95, %96 : vector<8x32xf32>
    %98 = math.tanh %97 : vector<8x32xf32>
    %99 = arith.mulf %94, %98 : vector<8x32xf32>
    %100 = arith.truncf %99 : vector<8x32xf32> to vector<8x32xbf16>
    %cst_35 = arith.constant dense<0.000000e+00> : vector<8x128xf32>
    %101 = tpu.matmul %100, %6, %cst_35 {dimension_numbers = #tpu.dot_dimension_numbers<[1], [0], [0], [1], [0, 0, 1, 1], [], []>} : vector<8x32xbf16>, vector<32x128xbf16>, vector<8x128xf32> -> vector<8x128xf32>
    %102 = arith.index_cast %c2_i32 : i32 to index
    %c0_36 = arith.constant 0 : index
    %c0_37 = arith.constant 0 : index
    %103 = vector.load %arg9[%102, %c0_36, %c0_37] : memref<8x8x128xf32, #tpu.memory_space<vmem>>, vector<1x8x128xf32>
    %104 = vector.shape_cast %103 : vector<1x8x128xf32> to vector<8x128xf32>
    %105 = vector.shape_cast %101 : vector<8x128xf32> to vector<1x8x128xf32>
    tpu.vector_store %arg9[%102, %c0_36, %c0_37], %105 {strides = array<i32>} : memref<8x8x128xf32, #tpu.memory_space<vmem>>, vector<1x8x128xf32>,
    %c3_i32 = arith.constant 3 : i32
    %106 = arith.index_cast %c3_i32 : i32 to index
    %c0_38 = arith.constant 0 : index
    %c0_39 = arith.constant 0 : index
    %107 = vector.load %arg9[%106, %c0_38, %c0_39] : memref<8x8x128xf32, #tpu.memory_space<vmem>>, vector<1x8x128xf32>
    %108 = vector.shape_cast %107 : vector<1x8x128xf32> to vector<8x128xf32>
    %109 = arith.addf %108, %10 : vector<8x128xf32>
    %110 = arith.truncf %99 : vector<8x32xf32> to vector<8x32xbf16>
    %cst_40 = arith.constant dense<0.000000e+00> : vector<8x128xf32>
    %111 = tpu.matmul %110, %4, %cst_40 {dimension_numbers = #tpu.dot_dimension_numbers<[1], [0], [0], [1], [0, 0, 1, 1], [], []>} : vector<8x32xbf16>, vector<32x128xbf16>, vector<8x128xf32> -> vector<8x128xf32>
    %112 = arith.addf %109, %111 : vector<8x128xf32>
    %113 = vector.extract_strided_slice %112 {offsets = [0, 0], sizes = [8, 96], strides = [1, 1]} : vector<8x128xf32> to vector<8x96xf32>
    %cst_41 = arith.constant 5.000000e-01 : f32
    %114 = vector.broadcast %cst_41 : f32 to vector<8x96xf32>
    %115 = arith.mulf %114, %113 : vector<8x96xf32>
    %116 = math.tanh %115 : vector<8x96xf32>
    %cst_42 = arith.constant 1.000000e+00 : f32
    %117 = vector.broadcast %cst_42 : f32 to vector<8x96xf32>
    %118 = arith.addf %116, %117 : vector<8x96xf32>
    %cst_43 = arith.constant 5.000000e-01 : f32
    %119 = vector.broadcast %cst_43 : f32 to vector<8x96xf32>
    %120 = arith.mulf %119, %118 : vector<8x96xf32>
    %121 = vector.extract_strided_slice %112 {offsets = [0, 96], sizes = [8, 32], strides = [1, 1]} : vector<8x128xf32> to vector<8x32xf32>
    %122 = math.tanh %121 : vector<8x32xf32>
    %123 = vector.extract_strided_slice %120 {offsets = [0, 0], sizes = [8, 32], strides = [1, 1]} : vector<8x96xf32> to vector<8x32xf32>
    %124 = vector.extract_strided_slice %120 {offsets = [0, 32], sizes = [8, 32], strides = [1, 1]} : vector<8x96xf32> to vector<8x32xf32>
    %125 = vector.extract_strided_slice %120 {offsets = [0, 64], sizes = [8, 32], strides = [1, 1]} : vector<8x96xf32> to vector<8x32xf32>
    %126 = arith.mulf %124, %97 : vector<8x32xf32>
    %127 = arith.mulf %123, %122 : vector<8x32xf32>
    %128 = arith.addf %126, %127 : vector<8x32xf32>
    %129 = math.tanh %128 : vector<8x32xf32>
    %130 = arith.mulf %125, %129 : vector<8x32xf32>
    %131 = arith.truncf %130 : vector<8x32xf32> to vector<8x32xbf16>
    %cst_44 = arith.constant dense<0.000000e+00> : vector<8x128xf32>
    %132 = tpu.matmul %131, %6, %cst_44 {dimension_numbers = #tpu.dot_dimension_numbers<[1], [0], [0], [1], [0, 0, 1, 1], [], []>} : vector<8x32xbf16>, vector<32x128xbf16>, vector<8x128xf32> -> vector<8x128xf32>
    %133 = arith.index_cast %c3_i32 : i32 to index
    %c0_45 = arith.constant 0 : index
    %c0_46 = arith.constant 0 : index
    %134 = vector.load %arg9[%133, %c0_45, %c0_46] : memref<8x8x128xf32, #tpu.memory_space<vmem>>, vector<1x8x128xf32>
    %135 = vector.shape_cast %134 : vector<1x8x128xf32> to vector<8x128xf32>
    %136 = vector.shape_cast %132 : vector<8x128xf32> to vector<1x8x128xf32>
    tpu.vector_store %arg9[%133, %c0_45, %c0_46], %136 {strides = array<i32>} : memref<8x8x128xf32, #tpu.memory_space<vmem>>, vector<1x8x128xf32>,
    %c4_i32 = arith.constant 4 : i32
    %137 = arith.index_cast %c4_i32 : i32 to index
    %c0_47 = arith.constant 0 : index
    %c0_48 = arith.constant 0 : index
    %138 = vector.load %arg9[%137, %c0_47, %c0_48] : memref<8x8x128xf32, #tpu.memory_space<vmem>>, vector<1x8x128xf32>
    %139 = vector.shape_cast %138 : vector<1x8x128xf32> to vector<8x128xf32>
    %140 = arith.addf %139, %10 : vector<8x128xf32>
    %141 = arith.truncf %130 : vector<8x32xf32> to vector<8x32xbf16>
    %cst_49 = arith.constant dense<0.000000e+00> : vector<8x128xf32>
    %142 = tpu.matmul %141, %4, %cst_49 {dimension_numbers = #tpu.dot_dimension_numbers<[1], [0], [0], [1], [0, 0, 1, 1], [], []>} : vector<8x32xbf16>, vector<32x128xbf16>, vector<8x128xf32> -> vector<8x128xf32>
    %143 = arith.addf %140, %142 : vector<8x128xf32>
    %144 = vector.extract_strided_slice %143 {offsets = [0, 0], sizes = [8, 96], strides = [1, 1]} : vector<8x128xf32> to vector<8x96xf32>
    %cst_50 = arith.constant 5.000000e-01 : f32
    %145 = vector.broadcast %cst_50 : f32 to vector<8x96xf32>
    %146 = arith.mulf %145, %144 : vector<8x96xf32>
    %147 = math.tanh %146 : vector<8x96xf32>
    %cst_51 = arith.constant 1.000000e+00 : f32
    %148 = vector.broadcast %cst_51 : f32 to vector<8x96xf32>
    %149 = arith.addf %147, %148 : vector<8x96xf32>
    %cst_52 = arith.constant 5.000000e-01 : f32
    %150 = vector.broadcast %cst_52 : f32 to vector<8x96xf32>
    %151 = arith.mulf %150, %149 : vector<8x96xf32>
    %152 = vector.extract_strided_slice %143 {offsets = [0, 96], sizes = [8, 32], strides = [1, 1]} : vector<8x128xf32> to vector<8x32xf32>
    %153 = math.tanh %152 : vector<8x32xf32>
    %154 = vector.extract_strided_slice %151 {offsets = [0, 0], sizes = [8, 32], strides = [1, 1]} : vector<8x96xf32> to vector<8x32xf32>
    %155 = vector.extract_strided_slice %151 {offsets = [0, 32], sizes = [8, 32], strides = [1, 1]} : vector<8x96xf32> to vector<8x32xf32>
    %156 = vector.extract_strided_slice %151 {offsets = [0, 64], sizes = [8, 32], strides = [1, 1]} : vector<8x96xf32> to vector<8x32xf32>
    %157 = arith.mulf %155, %128 : vector<8x32xf32>
    %158 = arith.mulf %154, %153 : vector<8x32xf32>
    %159 = arith.addf %157, %158 : vector<8x32xf32>
    %160 = math.tanh %159 : vector<8x32xf32>
    %161 = arith.mulf %156, %160 : vector<8x32xf32>
    %162 = arith.truncf %161 : vector<8x32xf32> to vector<8x32xbf16>
    %cst_53 = arith.constant dense<0.000000e+00> : vector<8x128xf32>
    %163 = tpu.matmul %162, %6, %cst_53 {dimension_numbers = #tpu.dot_dimension_numbers<[1], [0], [0], [1], [0, 0, 1, 1], [], []>} : vector<8x32xbf16>, vector<32x128xbf16>, vector<8x128xf32> -> vector<8x128xf32>
    %164 = arith.index_cast %c4_i32 : i32 to index
    %c0_54 = arith.constant 0 : index
    %c0_55 = arith.constant 0 : index
    %165 = vector.load %arg9[%164, %c0_54, %c0_55] : memref<8x8x128xf32, #tpu.memory_space<vmem>>, vector<1x8x128xf32>
    %166 = vector.shape_cast %165 : vector<1x8x128xf32> to vector<8x128xf32>
    %167 = vector.shape_cast %163 : vector<8x128xf32> to vector<1x8x128xf32>
    tpu.vector_store %arg9[%164, %c0_54, %c0_55], %167 {strides = array<i32>} : memref<8x8x128xf32, #tpu.memory_space<vmem>>, vector<1x8x128xf32>,
    %c5_i32 = arith.constant 5 : i32
    %168 = arith.index_cast %c5_i32 : i32 to index
    %c0_56 = arith.constant 0 : index
    %c0_57 = arith.constant 0 : index
    %169 = vector.load %arg9[%168, %c0_56, %c0_57] : memref<8x8x128xf32, #tpu.memory_space<vmem>>, vector<1x8x128xf32>
    %170 = vector.shape_cast %169 : vector<1x8x128xf32> to vector<8x128xf32>
    %171 = arith.addf %170, %10 : vector<8x128xf32>
    %172 = arith.truncf %161 : vector<8x32xf32> to vector<8x32xbf16>
    %cst_58 = arith.constant dense<0.000000e+00> : vector<8x128xf32>
    %173 = tpu.matmul %172, %4, %cst_58 {dimension_numbers = #tpu.dot_dimension_numbers<[1], [0], [0], [1], [0, 0, 1, 1], [], []>} : vector<8x32xbf16>, vector<32x128xbf16>, vector<8x128xf32> -> vector<8x128xf32>
    %174 = arith.addf %171, %173 : vector<8x128xf32>
    %175 = vector.extract_strided_slice %174 {offsets = [0, 0], sizes = [8, 96], strides = [1, 1]} : vector<8x128xf32> to vector<8x96xf32>
    %cst_59 = arith.constant 5.000000e-01 : f32
    %176 = vector.broadcast %cst_59 : f32 to vector<8x96xf32>
    %177 = arith.mulf %176, %175 : vector<8x96xf32>
    %178 = math.tanh %177 : vector<8x96xf32>
    %cst_60 = arith.constant 1.000000e+00 : f32
    %179 = vector.broadcast %cst_60 : f32 to vector<8x96xf32>
    %180 = arith.addf %178, %179 : vector<8x96xf32>
    %cst_61 = arith.constant 5.000000e-01 : f32
    %181 = vector.broadcast %cst_61 : f32 to vector<8x96xf32>
    %182 = arith.mulf %181, %180 : vector<8x96xf32>
    %183 = vector.extract_strided_slice %174 {offsets = [0, 96], sizes = [8, 32], strides = [1, 1]} : vector<8x128xf32> to vector<8x32xf32>
    %184 = math.tanh %183 : vector<8x32xf32>
    %185 = vector.extract_strided_slice %182 {offsets = [0, 0], sizes = [8, 32], strides = [1, 1]} : vector<8x96xf32> to vector<8x32xf32>
    %186 = vector.extract_strided_slice %182 {offsets = [0, 32], sizes = [8, 32], strides = [1, 1]} : vector<8x96xf32> to vector<8x32xf32>
    %187 = vector.extract_strided_slice %182 {offsets = [0, 64], sizes = [8, 32], strides = [1, 1]} : vector<8x96xf32> to vector<8x32xf32>
    %188 = arith.mulf %186, %159 : vector<8x32xf32>
    %189 = arith.mulf %185, %184 : vector<8x32xf32>
    %190 = arith.addf %188, %189 : vector<8x32xf32>
    %191 = math.tanh %190 : vector<8x32xf32>
    %192 = arith.mulf %187, %191 : vector<8x32xf32>
    %193 = arith.truncf %192 : vector<8x32xf32> to vector<8x32xbf16>
    %cst_62 = arith.constant dense<0.000000e+00> : vector<8x128xf32>
    %194 = tpu.matmul %193, %6, %cst_62 {dimension_numbers = #tpu.dot_dimension_numbers<[1], [0], [0], [1], [0, 0, 1, 1], [], []>} : vector<8x32xbf16>, vector<32x128xbf16>, vector<8x128xf32> -> vector<8x128xf32>
    %195 = arith.index_cast %c5_i32 : i32 to index
    %c0_63 = arith.constant 0 : index
    %c0_64 = arith.constant 0 : index
    %196 = vector.load %arg9[%195, %c0_63, %c0_64] : memref<8x8x128xf32, #tpu.memory_space<vmem>>, vector<1x8x128xf32>
    %197 = vector.shape_cast %196 : vector<1x8x128xf32> to vector<8x128xf32>
    %198 = vector.shape_cast %194 : vector<8x128xf32> to vector<1x8x128xf32>
    tpu.vector_store %arg9[%195, %c0_63, %c0_64], %198 {strides = array<i32>} : memref<8x8x128xf32, #tpu.memory_space<vmem>>, vector<1x8x128xf32>,
    %c6_i32 = arith.constant 6 : i32
    %199 = arith.index_cast %c6_i32 : i32 to index
    %c0_65 = arith.constant 0 : index
    %c0_66 = arith.constant 0 : index
    %200 = vector.load %arg9[%199, %c0_65, %c0_66] : memref<8x8x128xf32, #tpu.memory_space<vmem>>, vector<1x8x128xf32>
    %201 = vector.shape_cast %200 : vector<1x8x128xf32> to vector<8x128xf32>
    %202 = arith.addf %201, %10 : vector<8x128xf32>
    %203 = arith.truncf %192 : vector<8x32xf32> to vector<8x32xbf16>
    %cst_67 = arith.constant dense<0.000000e+00> : vector<8x128xf32>
    %204 = tpu.matmul %203, %4, %cst_67 {dimension_numbers = #tpu.dot_dimension_numbers<[1], [0], [0], [1], [0, 0, 1, 1], [], []>} : vector<8x32xbf16>, vector<32x128xbf16>, vector<8x128xf32> -> vector<8x128xf32>
    %205 = arith.addf %202, %204 : vector<8x128xf32>
    %206 = vector.extract_strided_slice %205 {offsets = [0, 0], sizes = [8, 96], strides = [1, 1]} : vector<8x128xf32> to vector<8x96xf32>
    %cst_68 = arith.constant 5.000000e-01 : f32
    %207 = vector.broadcast %cst_68 : f32 to vector<8x96xf32>
    %208 = arith.mulf %207, %206 : vector<8x96xf32>
    %209 = math.tanh %208 : vector<8x96xf32>
    %cst_69 = arith.constant 1.000000e+00 : f32
    %210 = vector.broadcast %cst_69 : f32 to vector<8x96xf32>
    %211 = arith.addf %209, %210 : vector<8x96xf32>
    %cst_70 = arith.constant 5.000000e-01 : f32
    %212 = vector.broadcast %cst_70 : f32 to vector<8x96xf32>
    %213 = arith.mulf %212, %211 : vector<8x96xf32>
    %214 = vector.extract_strided_slice %205 {offsets = [0, 96], sizes = [8, 32], strides = [1, 1]} : vector<8x128xf32> to vector<8x32xf32>
    %215 = math.tanh %214 : vector<8x32xf32>
    %216 = vector.extract_strided_slice %213 {offsets = [0, 0], sizes = [8, 32], strides = [1, 1]} : vector<8x96xf32> to vector<8x32xf32>
    %217 = vector.extract_strided_slice %213 {offsets = [0, 32], sizes = [8, 32], strides = [1, 1]} : vector<8x96xf32> to vector<8x32xf32>
    %218 = vector.extract_strided_slice %213 {offsets = [0, 64], sizes = [8, 32], strides = [1, 1]} : vector<8x96xf32> to vector<8x32xf32>
    %219 = arith.mulf %217, %190 : vector<8x32xf32>
    %220 = arith.mulf %216, %215 : vector<8x32xf32>
    %221 = arith.addf %219, %220 : vector<8x32xf32>
    %222 = math.tanh %221 : vector<8x32xf32>
    %223 = arith.mulf %218, %222 : vector<8x32xf32>
    %224 = arith.truncf %223 : vector<8x32xf32> to vector<8x32xbf16>
    %cst_71 = arith.constant dense<0.000000e+00> : vector<8x128xf32>
    %225 = tpu.matmul %224, %6, %cst_71 {dimension_numbers = #tpu.dot_dimension_numbers<[1], [0], [0], [1], [0, 0, 1, 1], [], []>} : vector<8x32xbf16>, vector<32x128xbf16>, vector<8x128xf32> -> vector<8x128xf32>
    %226 = arith.index_cast %c6_i32 : i32 to index
    %c0_72 = arith.constant 0 : index
    %c0_73 = arith.constant 0 : index
    %227 = vector.load %arg9[%226, %c0_72, %c0_73] : memref<8x8x128xf32, #tpu.memory_space<vmem>>, vector<1x8x128xf32>
    %228 = vector.shape_cast %227 : vector<1x8x128xf32> to vector<8x128xf32>
    %229 = vector.shape_cast %225 : vector<8x128xf32> to vector<1x8x128xf32>
    tpu.vector_store %arg9[%226, %c0_72, %c0_73], %229 {strides = array<i32>} : memref<8x8x128xf32, #tpu.memory_space<vmem>>, vector<1x8x128xf32>,
    %c7_i32 = arith.constant 7 : i32
    %230 = arith.index_cast %c7_i32 : i32 to index
    %c0_74 = arith.constant 0 : index
    %c0_75 = arith.constant 0 : index
    %231 = vector.load %arg9[%230, %c0_74, %c0_75] : memref<8x8x128xf32, #tpu.memory_space<vmem>>, vector<1x8x128xf32>
    %232 = vector.shape_cast %231 : vector<1x8x128xf32> to vector<8x128xf32>
    %233 = arith.addf %232, %10 : vector<8x128xf32>
    %234 = arith.truncf %223 : vector<8x32xf32> to vector<8x32xbf16>
    %cst_76 = arith.constant dense<0.000000e+00> : vector<8x128xf32>
    %235 = tpu.matmul %234, %4, %cst_76 {dimension_numbers = #tpu.dot_dimension_numbers<[1], [0], [0], [1], [0, 0, 1, 1], [], []>} : vector<8x32xbf16>, vector<32x128xbf16>, vector<8x128xf32> -> vector<8x128xf32>
    %236 = arith.addf %233, %235 : vector<8x128xf32>
    %237 = vector.extract_strided_slice %236 {offsets = [0, 0], sizes = [8, 96], strides = [1, 1]} : vector<8x128xf32> to vector<8x96xf32>
    %cst_77 = arith.constant 5.000000e-01 : f32
    %238 = vector.broadcast %cst_77 : f32 to vector<8x96xf32>
    %239 = arith.mulf %238, %237 : vector<8x96xf32>
    %240 = math.tanh %239 : vector<8x96xf32>
    %cst_78 = arith.constant 1.000000e+00 : f32
    %241 = vector.broadcast %cst_78 : f32 to vector<8x96xf32>
    %242 = arith.addf %240, %241 : vector<8x96xf32>
    %cst_79 = arith.constant 5.000000e-01 : f32
    %243 = vector.broadcast %cst_79 : f32 to vector<8x96xf32>
    %244 = arith.mulf %243, %242 : vector<8x96xf32>
    %245 = vector.extract_strided_slice %236 {offsets = [0, 96], sizes = [8, 32], strides = [1, 1]} : vector<8x128xf32> to vector<8x32xf32>
    %246 = math.tanh %245 : vector<8x32xf32>
    %247 = vector.extract_strided_slice %244 {offsets = [0, 0], sizes = [8, 32], strides = [1, 1]} : vector<8x96xf32> to vector<8x32xf32>
    %248 = vector.extract_strided_slice %244 {offsets = [0, 32], sizes = [8, 32], strides = [1, 1]} : vector<8x96xf32> to vector<8x32xf32>
    %249 = vector.extract_strided_slice %244 {offsets = [0, 64], sizes = [8, 32], strides = [1, 1]} : vector<8x96xf32> to vector<8x32xf32>
    %250 = arith.mulf %248, %221 : vector<8x32xf32>
    %251 = arith.mulf %247, %246 : vector<8x32xf32>
    %252 = arith.addf %250, %251 : vector<8x32xf32>
    %253 = math.tanh %252 : vector<8x32xf32>
    %254 = arith.mulf %249, %253 : vector<8x32xf32>
    %255 = arith.truncf %254 : vector<8x32xf32> to vector<8x32xbf16>
    %cst_80 = arith.constant dense<0.000000e+00> : vector<8x128xf32>
    %256 = tpu.matmul %255, %6, %cst_80 {dimension_numbers = #tpu.dot_dimension_numbers<[1], [0], [0], [1], [0, 0, 1, 1], [], []>} : vector<8x32xbf16>, vector<32x128xbf16>, vector<8x128xf32> -> vector<8x128xf32>
    %257 = arith.index_cast %c7_i32 : i32 to index
    %c0_81 = arith.constant 0 : index
    %c0_82 = arith.constant 0 : index
    %258 = vector.load %arg9[%257, %c0_81, %c0_82] : memref<8x8x128xf32, #tpu.memory_space<vmem>>, vector<1x8x128xf32>
    %259 = vector.shape_cast %258 : vector<1x8x128xf32> to vector<8x128xf32>
    %260 = vector.shape_cast %256 : vector<8x128xf32> to vector<1x8x128xf32>
    tpu.vector_store %arg9[%257, %c0_81, %c0_82], %260 {strides = array<i32>} : memref<8x8x128xf32, #tpu.memory_space<vmem>>, vector<1x8x128xf32>,
    %c8_i32 = arith.constant 8 : i32
    %c0_83 = arith.constant 0 : index
    %c0_84 = arith.constant 0 : index
    %261 = vector.load %arg6[%c0_83, %c0_84] : memref<32x128xf32, #tpu.memory_space<vmem>>, vector<32x128xf32>
    %cst_85 = arith.constant dense<0.000000e+00> : vector<8x128xf32>
    %262 = tpu.matmul %254, %261, %cst_85 {dimension_numbers = #tpu.dot_dimension_numbers<[1], [0], [0], [1], [0, 0, 1, 1], [], []>} : vector<8x32xf32>, vector<32x128xf32>, vector<8x128xf32> -> vector<8x128xf32>
    %c0_86 = arith.constant 0 : index
    %c0_87 = arith.constant 0 : index
    %263 = vector.load %arg7[%c0_86, %c0_87] : memref<1x128xf32, #tpu.memory_space<vmem>>, vector<1x128xf32>
    %264 = vector.broadcast %263 : vector<1x128xf32> to vector<8x128xf32>
    %265 = arith.addf %262, %264 : vector<8x128xf32>
    %c0_88 = arith.constant 0 : index
    %c0_89 = arith.constant 0 : index
    %266 = vector.load %arg8[%c0_88, %c0_89] : memref<8x128xf32, #tpu.memory_space<vmem>>, vector<8x128xf32>
    tpu.vector_store %arg8[%c0_88, %c0_89], %265 {strides = array<i32>} : memref<8x128xf32, #tpu.memory_space<vmem>>, vector<8x128xf32>,
    return
  }
  func.func @transform_0(%arg0: i32) -> (i32, i32, i32) {
    %c0_i32 = arith.constant 0 : i32
    %c0_i32_0 = arith.constant 0 : i32
    %c0_i32_1 = arith.constant 0 : i32
    %c0_i32_2 = arith.constant 0 : i32
    return %c0_i32, %c0_i32_0, %c0_i32_1 : i32, i32, i32
  }
  func.func @transform_1(%arg0: i32) -> (i32, i32) {
    %c0_i32 = arith.constant 0 : i32
    %c0_i32_0 = arith.constant 0 : i32
    %c0_i32_1 = arith.constant 0 : i32
    return %c0_i32, %c0_i32_0 : i32, i32
  }
  func.func @transform_2(%arg0: i32) -> (i32, i32, i32) {
    %c0_i32 = arith.constant 0 : i32
    %c0_i32_0 = arith.constant 0 : i32
    %c0_i32_1 = arith.constant 0 : i32
    return %arg0, %c0_i32, %c0_i32_0 : i32, i32, i32
  }
  func.func @transform_3(%arg0: i32) -> (i32, i32, i32) {
    %c0_i32 = arith.constant 0 : i32
    %c0_i32_0 = arith.constant 0 : i32
    %c0_i32_1 = arith.constant 0 : i32
    return %arg0, %c0_i32, %c0_i32_0 : i32, i32, i32
  }
  func.func @transform_4(%arg0: i32) -> (i32, i32, i32) {
    %c0_i32 = arith.constant 0 : i32
    %c0_i32_0 = arith.constant 0 : i32
    %c0_i32_1 = arith.constant 0 : i32
    return %arg0, %c0_i32, %c0_i32_0 : i32, i32, i32
  }
  func.func @transform_5(%arg0: i32) -> (i32, i32) {
    %c0_i32 = arith.constant 0 : i32
    %c0_i32_0 = arith.constant 0 : i32
    %c0_i32_1 = arith.constant 0 : i32
    return %c0_i32, %c0_i32_0 : i32, i32
  }
  func.func @transform_6(%arg0: i32) -> (i32, i32) {
    %c0_i32 = arith.constant 0 : i32
    %c0_i32_0 = arith.constant 0 : i32
    %c0_i32_1 = arith.constant 0 : i32
    return %c0_i32, %c0_i32_0 : i32, i32
  }
  func.func @transform_7(%arg0: i32) -> (i32, i32) {
    %c0_i32 = arith.constant 0 : i32
    %c0_i32_0 = arith.constant 0 : i32
    return %arg0, %c0_i32 : i32, i32
  }
}

</mosaic_0001>

<bundles_post_ra>
// kernel: lstm_model_forward.1
= control target key start
LH: loop header
LB: loop body
LE: loop exit
PB: predicated region body
PF: predicated region fallthrough
CT: control target
= control target key end

     0   :  { %s1922_s24 = smov 0   ;;  %s2184_s0 = inlined_call_operand.vmem [shape: f32[8,8,32], index: 0, kind: input, shape index: {}]   ;;  %s2185_s1 = inlined_call_operand.vmem [shape: bf16[32,128], index: 1, kind: input, shape index: {}]   ;;  %s2186_s2 = inlined_call_operand.vmem [shape: bf16[4,32,128], index: 2, kind: input, shape index: {}]   ;;  %s2187_s3 = inlined_call_operand.vmem [shape: bf16[4,32,128], index: 3, kind: input, shape index: {}]   ;;  %s2188_s4 = inlined_call_operand.vmem [shape: f32[4,1,128], index: 4, kind: input, shape index: {}]   ;;  %s2189_s5 = inlined_call_operand.vmem [shape: f32[32,128], index: 5, kind: input, shape index: {}]   ;;  %s2190_s6 = inlined_call_operand.vmem [shape: f32[1,128], index: 6, kind: input, shape index: {}]   ;;  %s2191_s7 = inlined_call_operand.vmem [shape: f32[32,128], index: 7, kind: output, shape index: {}]  }
   0x1 LB: > { %s1545_s25 = sadd.s32 4294967295, %s1875_s24   ;;  %p1549_p0 = scmp.ge.s32.totalorder %s1875_s24, 1  ;;  %s1875_s24 = sphi %s1922_s24, %s17_s24  }
   0x2   : > { %p255_p1 = scmp.lt.s32.totalorder %s1875_s24, 5 }
   0x4   : > { %p256_p2 = pnand %p1549_p0, %p255_p1 }
   0x5   : > { %p294_p3 = scmp.lt.s32.totalorder (!%p256_p2), %s1545_s25, 3  ;;  %p1555_p4 = scmp.ne.s32.totalorder (!%p256_p2), %s1545_s25, 0 }
   0x6   : > { %259 = sbr.rel (%p256_p2) target bundleno = 5962 (0x174a), region = 48 }
   0xb   : > { %s1930_s26 = scalar_select %p294_p3, %s1545_s25, 3 }
   0xc   : > { %315 = sbr.rel (%p1555_p4) target bundleno = 226 (0xe2), region = 52 }
   0xd   : > { %s1586_s27 = sshll.u32 %s1930_s26, 4  ;;  %s306_s30 = scalar_lea.vmem %s2188_s4, %s1930_s26 }
   0xe   : > { %s1940_s10 = scalar_lea.vmem %s2186_s2, %s1586_s27  ;;  %s1945_s13 = scalar_lea.vmem %s2187_s3, %s1586_s27 }
   0xf   : > { %s1554_s14 = sshll.u32 %s1930_s26, 3 }
  0x10   : > { %s1951_s17 = scalar_lea.vmem %s2191_s7, %s1554_s14 }
  0x11   : > { %v1815_v0 = vld [vmem:[%s2185_s1 + $0x8] sm:$0xff]   ;;  %v1816_v1 = vld [vmem:[%s2185_s1] sm:$0xff]   ;;  %vm344_vm0 = vcmask 261120   ;;  %v318_v7 = vld [vmem:[%s2184_s0 + $0x10] sm:$0xff] }
  0x12   : > { %1647 = vmatprep.subr.bf16.mxu0 %v1815_v0  ;;  %1798 = vmatprep.subr.bf16.mxu1 %v1815_v0  ;;  %v316_v2 = vld [vmem:[%s2184_s0] sm:$0xff]  ;;  %v317_v3 = vld [vmem:[%s2184_s0 + $0x8] sm:$0xff]  ;;  %v319_v8 = vld [vmem:[%s2184_s0 + $0x18] sm:$0xff] }
  0x13   : > { %v320_v4 = vld [vmem:[%s2184_s0 + $0x20] sm:$0xff]  ;;  %1648 = vmatpush3.bf16.msra.mxu0 %v1815_v0  ;;  %1800 = vmatpush3.bf16.msra.mxu1 %v1815_v0  ;;  %v324_v5 = vpack.c.bf16 %v317_v3, %v316_v2  ;;  %v321_v6 = vld [vmem:[%s2184_s0 + $0x28] sm:$0xff]  ;;  %v322_v10 = vld [vmem:[%s2184_s0 + $0x30] sm:$0xff]  ;;  %v325_v12 = vpack.c.bf16 %v319_v8, %v318_v7 }
  0x14   : > { %1649 = vmatprep.subr.bf16.mxu0 %v1816_v1  ;;  %1799 = vmatprep.subr.bf16.mxu1 %v1816_v1  ;;  %v326_v9 = vpack.c.bf16 %v321_v6, %v320_v4  ;;  %v323_v11 = vld [vmem:[%s2184_s0 + $0x38] sm:$0xff] }
  0x15   : > { %1651 = vmatprep.mubr.msk.bf16.mxu0 %vm344_vm0, %v324_v5  ;;  %v327_v13 = vpack.c.bf16 %v323_v11, %v322_v10 }
  0x16   : > { %1655 = vmatprep.mubr.msk.bf16.mxu1 %vm344_vm0, %v326_v9 }
  0x17   : > { %1650 = vmatpush3.bf16.msra.mxu0 %v1816_v1  ;;  %1801 = vmatpush3.bf16.msra.mxu1 %v1816_v1 }
  0x1a   : > { %1652 = vmatmul.mubr.msk.bf16.vlgmr.msra.gmra.mxu0 %vm344_vm0, %v325_v12  ;;  %1656 = vmatmul.mubr.msk.bf16.vlgmr.msra.gmra.mxu1 %vm344_vm0, %v327_v13 }
  0xda   : > { %v1653_v14 = vpop.f32.mrf.mxu0  ;;  %v1657_v15 = vpop.f32.mrf.mxu1 }
  0xdb   : > { %424 = vst [vmem:[#allocation2 + $0x18] sm:$0xff] %v1653_v14  ;;  %428 = vst [vmem:[#allocation2 + $0x28] sm:$0xff] %v1657_v15 }
  0xdc   : > { %v391_v16 = vpop.f32.mrf.mxu0  ;;  %v407_v17 = vpop.f32.mrf.mxu1 }
  0xdd   : > { %422 = vst [vmem:[#allocation2 + $0x30] sm:$0xff] %v391_v16  ;;  %426 = vst [vmem:[#allocation2 + $0x8] sm:$0xff] %v407_v17 }
  0xde   : > { %v1654_v18 = vpop.f32.mrf.mxu0  ;;  %v1658_v19 = vpop.f32.mrf.mxu1 }
  0xdf   : > { %425 = vst [vmem:[#allocation2 + $0x10] sm:$0xff] %v1654_v18  ;;  %429 = vst [vmem:[#allocation2 + $0x38] sm:$0xff] %v1658_v19 }
  0xe0   : > { %v394_v20 = vpop.f32.mrf.mxu0  ;;  %v410_v21 = vpop.f32.mrf.mxu1 }
  0xe1   : > { %423 = vst [vmem:[#allocation2] sm:$0xff] %v394_v20  ;;  %427 = vst [vmem:[#allocation2 + $0x20] sm:$0xff] %v410_v21 }
  0xe2 PF: > { %v1988_v22 = vld [vmem:[%s1945_s13 + $0x8] sm:$0xff]   ;;  %v1877_v23 = vmov 0.0   ;;  %v1994_v24 = vld [vmem:[%s1945_s13] sm:$0xff]   ;;  %vm1878_vm1 = vmmov 0   ;;  %v1879_v25 = vmov 0   ;;  %s1880_s22 = smov 32  }
  0xe3   : > { %1659 = vmatprep.subr.bf16.mxu0 %v1877_v23  ;;  %1667 = vmatprep.subr.bf16.mxu1 %v1877_v23  ;;  %v2014_v26 = vld [vmem:[%s306_s30] ss:$0 sm:$0xff]  ;;  %v2020_v44 = vld [vmem:[%s1940_s10 + $0x8] sm:$0xff]   ;;  %s1881_s26 = smov 64   ;;  %vm459_vm2 = vcmask 261120   ;;  %v701_v13 = vld [vmem:[#allocation2 + $0x18] sm:$0xff] }
  0xe4   : > { %1660 = vmatpush3.bf16.msra.mxu0 %v1988_v22  ;;  %1663 = vmatprep.mubr.msk.bf16.mxu0 %vm1878_vm1, %v1877_v23  ;;  %v445_v27 = vld [vmem:[#allocation2 + $0x30] sm:$0xff]  ;;  %v2024_v45 = vld [vmem:[%s1940_s10] sm:$0xff]   ;;  %v702_v14 = vadd.f32 %v2014_v26, %v701_v13 }
  0xe5   : > { %1661 = vmatprep.subr.bf16.mxu0 %v1877_v23  ;;  %1671 = vmatprep.mubr.msk.bf16.mxu1 %vm1878_vm1, %v1877_v23  ;;  %v446_v28 = vadd.f32 %v2014_v26, %v445_v27 }
  0xe6   : > { %1668 = vmatpush3.bf16.msra.mxu1 %v2020_v44 }
  0xe7   : > { %1669 = vmatprep.subr.bf16.mxu1 %v1877_v23 }
  0xe8   : > { %1662 = vmatpush3.bf16.msra.mxu0 %v1994_v24  ;;  %v587_v51 = vld [vmem:[#allocation2] sm:$0xff] }
  0xe9   : > { %1675 = vmatprep.subr.bf16.mxu0 %v1877_v23  ;;  %v588_v52 = vadd.f32 %v2014_v26, %v587_v51 }
  0xea   : > { %1670 = vmatpush3.bf16.msra.mxu1 %v2024_v45 }
  0xeb   : > { %1664 = vmatmul.mubr.bf16.vlgmr.msra.gmra.mxu0 %v1879_v25  ;;  %1683 = vmatprep.subr.bf16.mxu1 %v1877_v23 }
  0xec   : > { %1676 = vmatpush3.bf16.msra.mxu0 %v1988_v22  ;;  %1679 = vmatprep.mubr.msk.bf16.mxu0 %vm1878_vm1, %v1877_v23 }
  0xed   : > { %1677 = vmatprep.subr.bf16.mxu0 %v1877_v23 }
  0xf0   : > { %1678 = vmatpush3.bf16.msra.mxu0 %v1994_v24 }
  0xf1   : > { %1691 = vmatprep.subr.bf16.mxu0 %v1877_v23 }
 0x1ab   : > { %v497_v29 = vpop.f32.mrf.mxu0 }
 0x1ac   : > { %v503_v30 = vadd.f32 %v497_v29, %v446_v28 }
 0x1ad   : > { %v1665_v31 = vpop.f32.mrf.mxu0 }
 0x1ae   : > { %1821 = vtanh.f32 %v503_v30  ;;  %v504_v35 = vmul.f32 0.5, %v503_v30 }
 0x1af   : > { %v500_v32 = vpop.f32.mrf.mxu0 }
 0x1b0   : > { %1823 = vtanh.f32 %v504_v35 }
 0x1b1   : > { %v1666_v33 = vpop.f32.mrf.mxu0 }
 0x1bb   : > { %v1822_v34 = vpop.eup %1821 }
 0x1bc   : > { %511 = vrot.lane.b32.xlu0 %v1822_v34, %s1880_s22 }
 0x1bd   : > { %v1824_v36 = vpop.eup %1823 }
 0x1be   : > { %v506_v37 = vadd.f32 1.0, %v1824_v36 }
 0x1c0   : > { %v507_v38 = vmul.f32 0.5, %v506_v37 }
 0x1c2   : > { %v509_v41 = vmul.f32 0.0, %v507_v38 }
 0x22e   : > { %v512_v39 = vpop.permute.xlu0 %511 }
 0x22f   : > { %v514_v40 = vmul.f32 %v512_v39, %v507_v38 }
 0x231   : > { %516 = vrot.lane.b32.xlu0 %v514_v40, %s1880_s22 }
 0x2a3   : > { %v517_v42 = vpop.permute.xlu0 %516 }
 0x2a4   : > { %v519_v43 = vadd.f32 %v517_v42, %v509_v41 }
 0x2a6   : > { %1825 = vtanh.f32 %v519_v43 }
 0x2b3   : > { %v1826_v46 = vpop.eup %1825 }
 0x2b4   : > { %522 = vrot.lane.b32.xlu1 %v1826_v46, %s1880_s22 }
 0x326   : > { %v523_v47 = vpop.permute.xlu1 %522 }
 0x327   : > { %v525_v48 = vmul.f32 %v523_v47, %v507_v38 }
 0x329   : > { %v526_v49 = vpack.c.bf16 %v525_v48, %v525_v48 }
 0x32b   : > { %528 = vrot.lane.b32.xlu1 %v526_v49, %s1881_s26 }
 0x39d   : > { %v529_v50 = vpop.permute.xlu1 %528 }
 0x39e   : > { %1672 = vmatmul.mubr.msk.bf16.vlgmr.msra.gmra.mxu1 %vm459_vm2, %v529_v50  ;;  %1680 = vmatmul.mubr.msk.bf16.vlgmr.msra.gmra.mxu0 %vm459_vm2, %v529_v50 }
 0x39f   : > { %1692 = vmatpush3.bf16.msra.mxu0 %v1988_v22  ;;  %1684 = vmatpush3.bf16.msra.mxu1 %v2020_v44 }
 0x3a0   : > { %1693 = vmatprep.subr.bf16.mxu0 %v1877_v23  ;;  %1685 = vmatprep.subr.bf16.mxu1 %v1877_v23 }
 0x3a1   : > { %1687 = vmatprep.mubr.msk.bf16.mxu1 %vm1878_vm1, %v1877_v23  ;;  %1695 = vmatprep.mubr.msk.bf16.mxu0 %vm1878_vm1, %v1877_v23 }
 0x3a3   : > { %1694 = vmatpush3.bf16.msra.mxu0 %v1994_v24  ;;  %1686 = vmatpush3.bf16.msra.mxu1 %v2024_v45 }
 0x3a4   : > { %1707 = vmatprep.subr.bf16.mxu0 %v1877_v23  ;;  %1699 = vmatprep.subr.bf16.mxu1 %v1877_v23 }
 0x45e   : > { %v579_v53 = vpop.f32.mrf.mxu1  ;;  %v623_v54 = vpop.f32.mrf.mxu0 }
 0x45f   : > { %585 = vst [vmem:[#allocation2 + $0x30] sm:$0xff] %v579_v53  ;;  %v629_v55 = vadd.f32 %v623_v54, %v588_v52 }
 0x460   : > { %v1673_v56 = vpop.f32.mrf.mxu1  ;;  %v1681_v57 = vpop.f32.mrf.mxu0 }
 0x461   : > { %1827 = vtanh.f32 %v629_v55  ;;  %v630_v63 = vmul.f32 0.5, %v629_v55 }
 0x462   : > { %v582_v58 = vpop.f32.mrf.mxu1  ;;  %v626_v59 = vpop.f32.mrf.mxu0 }
 0x463   : > { %1829 = vtanh.f32 %v630_v63 }
 0x464   : > { %v1674_v60 = vpop.f32.mrf.mxu1  ;;  %v1682_v61 = vpop.f32.mrf.mxu0 }
 0x46e   : > { %v1828_v62 = vpop.eup %1827 }
 0x46f   : > { %637 = vrot.lane.b32.xlu0 %v1828_v62, %s1880_s22 }
 0x470   : > { %v1830_v0 = vpop.eup %1829 }
 0x471   : > { %v632_v1 = vadd.f32 1.0, %v1830_v0 }
 0x473   : > { %v633_v2 = vmul.f32 0.5, %v632_v1 }
 0x475   : > { %v635_v5 = vmul.f32 %v633_v2, %v519_v43  ;;  %v815_v43 = vld [vmem:[#allocation2 + $0x10] sm:$0xff] }
 0x476   : > { %v816_v46 = vadd.f32 %v2014_v26, %v815_v43 }
 0x4e1   : > { %v638_v3 = vpop.permute.xlu0 %637 }
 0x4e2   : > { %v640_v4 = vmul.f32 %v638_v3, %v633_v2 }
 0x4e4   : > { %642 = vrot.lane.b32.xlu1 %v640_v4, %s1880_s22 }
 0x556   : > { %v643_v6 = vpop.permute.xlu1 %642 }
 0x557   : > { %v645_v7 = vadd.f32 %v643_v6, %v635_v5 }
 0x559   : > { %1831 = vtanh.f32 %v645_v7 }
 0x566   : > { %v1832_v8 = vpop.eup %1831 }
 0x567   : > { %648 = vrot.lane.b32.xlu0 %v1832_v8, %s1880_s22 }
 0x5d9   : > { %v649_v9 = vpop.permute.xlu0 %648 }
 0x5da   : > { %v651_v10 = vmul.f32 %v649_v9, %v633_v2 }
 0x5dc   : > { %v652_v11 = vpack.c.bf16 %v651_v10, %v651_v10 }
 0x5de   : > { %654 = vrot.lane.b32.xlu1 %v652_v11, %s1881_s26 }
 0x650   : > { %v655_v12 = vpop.permute.xlu1 %654 }
 0x651   : > { %1688 = vmatmul.mubr.msk.bf16.vlgmr.msra.gmra.mxu1 %vm459_vm2, %v655_v12  ;;  %1696 = vmatmul.mubr.msk.bf16.vlgmr.msra.gmra.mxu0 %vm459_vm2, %v655_v12 }
 0x652   : > { %1708 = vmatpush3.bf16.msra.mxu0 %v1988_v22  ;;  %1700 = vmatpush3.bf16.msra.mxu1 %v2020_v44 }
 0x653   : > { %1709 = vmatprep.subr.bf16.mxu0 %v1877_v23  ;;  %1701 = vmatprep.subr.bf16.mxu1 %v1877_v23 }
 0x654   : > { %1703 = vmatprep.mubr.msk.bf16.mxu1 %vm1878_vm1, %v1877_v23  ;;  %1711 = vmatprep.mubr.msk.bf16.mxu0 %vm1878_vm1, %v1877_v23 }
 0x656   : > { %1710 = vmatpush3.bf16.msra.mxu0 %v1994_v24  ;;  %1702 = vmatpush3.bf16.msra.mxu1 %v2024_v45 }
 0x657   : > { %1723 = vmatprep.subr.bf16.mxu0 %v1877_v23  ;;  %1715 = vmatprep.subr.bf16.mxu1 %v1877_v23 }
 0x711   : > { %v693_v15 = vpop.f32.mrf.mxu1  ;;  %v737_v16 = vpop.f32.mrf.mxu0 }
 0x712   : > { %699 = vst [vmem:[#allocation2] sm:$0xff] %v693_v15  ;;  %v743_v17 = vadd.f32 %v737_v16, %v702_v14 }
 0x713   : > { %v1689_v18 = vpop.f32.mrf.mxu1  ;;  %v1697_v19 = vpop.f32.mrf.mxu0 }
 0x714   : > { %1833 = vtanh.f32 %v743_v17  ;;  %v744_v29 = vmul.f32 0.5, %v743_v17 }
 0x715   : > { %v696_v20 = vpop.f32.mrf.mxu1  ;;  %v740_v21 = vpop.f32.mrf.mxu0 }
 0x716   : > { %1835 = vtanh.f32 %v744_v29 }
 0x717   : > { %v1690_v25 = vpop.f32.mrf.mxu1  ;;  %v1698_v27 = vpop.f32.mrf.mxu0 }
 0x721   : > { %v1834_v28 = vpop.eup %1833 }
 0x722   : > { %751 = vrot.lane.b32.xlu0 %v1834_v28, %s1880_s22 }
 0x723   : > { %v1836_v30 = vpop.eup %1835 }
 0x724   : > { %v746_v31 = vadd.f32 1.0, %v1836_v30 }
 0x726   : > { %v747_v32 = vmul.f32 0.5, %v746_v31 }
 0x728   : > { %v749_v35 = vmul.f32 %v747_v32, %v645_v7  ;;  %v929_v7 = vld [vmem:[#allocation2 + $0x8] sm:$0xff] }
 0x729   : > { %v930_v8 = vadd.f32 %v2014_v26, %v929_v7 }
 0x794   : > { %v752_v33 = vpop.permute.xlu0 %751 }
 0x795   : > { %v754_v34 = vmul.f32 %v752_v33, %v747_v32 }
 0x797   : > { %756 = vrot.lane.b32.xlu1 %v754_v34, %s1880_s22 }
 0x809   : > { %v757_v36 = vpop.permute.xlu1 %756 }
 0x80a   : > { %v759_v37 = vadd.f32 %v757_v36, %v749_v35 }
 0x80c   : > { %1837 = vtanh.f32 %v759_v37 }
 0x819   : > { %v1838_v38 = vpop.eup %1837 }
 0x81a   : > { %762 = vrot.lane.b32.xlu0 %v1838_v38, %s1880_s22 }
 0x88c   : > { %v763_v39 = vpop.permute.xlu0 %762 }
 0x88d   : > { %v765_v40 = vmul.f32 %v763_v39, %v747_v32 }
 0x88f   : > { %v766_v41 = vpack.c.bf16 %v765_v40, %v765_v40 }
 0x891   : > { %768 = vrot.lane.b32.xlu1 %v766_v41, %s1881_s26 }
 0x903   : > { %v769_v42 = vpop.permute.xlu1 %768 }
 0x904   : > { %1704 = vmatmul.mubr.msk.bf16.vlgmr.msra.gmra.mxu1 %vm459_vm2, %v769_v42  ;;  %1712 = vmatmul.mubr.msk.bf16.vlgmr.msra.gmra.mxu0 %vm459_vm2, %v769_v42 }
 0x905   : > { %1724 = vmatpush3.bf16.msra.mxu0 %v1988_v22  ;;  %1716 = vmatpush3.bf16.msra.mxu1 %v2020_v44 }
 0x906   : > { %1725 = vmatprep.subr.bf16.mxu0 %v1877_v23  ;;  %1717 = vmatprep.subr.bf16.mxu1 %v1877_v23 }
 0x907   : > { %1719 = vmatprep.mubr.msk.bf16.mxu1 %vm1878_vm1, %v1877_v23  ;;  %1727 = vmatprep.mubr.msk.bf16.mxu0 %vm1878_vm1, %v1877_v23 }
 0x909   : > { %1726 = vmatpush3.bf16.msra.mxu0 %v1994_v24  ;;  %1718 = vmatpush3.bf16.msra.mxu1 %v2024_v45 }
 0x90a   : > { %1739 = vmatprep.subr.bf16.mxu0 %v1877_v23  ;;  %1731 = vmatprep.subr.bf16.mxu1 %v1877_v23 }
 0x9c4   : > { %v807_v47 = vpop.f32.mrf.mxu1  ;;  %v851_v48 = vpop.f32.mrf.mxu0 }
 0x9c5   : > { %813 = vst [vmem:[#allocation2 + $0x18] sm:$0xff] %v807_v47  ;;  %v857_v49 = vadd.f32 %v851_v48, %v816_v46 }
 0x9c6   : > { %v1705_v50 = vpop.f32.mrf.mxu1  ;;  %v1713_v51 = vpop.f32.mrf.mxu0 }
 0x9c7   : > { %1839 = vtanh.f32 %v857_v49  ;;  %v858_v57 = vmul.f32 0.5, %v857_v49 }
 0x9c8   : > { %v810_v52 = vpop.f32.mrf.mxu1  ;;  %v854_v53 = vpop.f32.mrf.mxu0 }
 0x9c9   : > { %1841 = vtanh.f32 %v858_v57 }
 0x9ca   : > { %v1706_v54 = vpop.f32.mrf.mxu1  ;;  %v1714_v55 = vpop.f32.mrf.mxu0 }
 0x9d4   : > { %v1840_v56 = vpop.eup %1839 }
 0x9d5   : > { %865 = vrot.lane.b32.xlu0 %v1840_v56, %s1880_s22 }
 0x9d6   : > { %v1842_v58 = vpop.eup %1841 }
 0x9d7   : > { %v860_v59 = vadd.f32 1.0, %v1842_v58 }
 0x9d9   : > { %v861_v60 = vmul.f32 0.5, %v860_v59 }
 0x9db   : > { %v863_v63 = vmul.f32 %v861_v60, %v759_v37  ;;  %v1043_v37 = vld [vmem:[#allocation2 + $0x20] sm:$0xff] }
 0x9dc   : > { %v1044_v38 = vadd.f32 %v2014_v26, %v1043_v37 }
 0xa47   : > { %v866_v61 = vpop.permute.xlu0 %865 }
 0xa48   : > { %v868_v62 = vmul.f32 %v866_v61, %v861_v60 }
 0xa4a   : > { %870 = vrot.lane.b32.xlu1 %v868_v62, %s1880_s22 }
 0xabc   : > { %v871_v0 = vpop.permute.xlu1 %870 }
 0xabd   : > { %v873_v1 = vadd.f32 %v871_v0, %v863_v63 }
 0xabf   : > { %1843 = vtanh.f32 %v873_v1 }
 0xacc   : > { %v1844_v2 = vpop.eup %1843 }
 0xacd   : > { %876 = vrot.lane.b32.xlu0 %v1844_v2, %s1880_s22 }
 0xb3f   : > { %v877_v3 = vpop.permute.xlu0 %876 }
 0xb40   : > { %v879_v4 = vmul.f32 %v877_v3, %v861_v60 }
 0xb42   : > { %v880_v5 = vpack.c.bf16 %v879_v4, %v879_v4 }
 0xb44   : > { %882 = vrot.lane.b32.xlu1 %v880_v5, %s1881_s26 }
 0xbb6   : > { %v883_v6 = vpop.permute.xlu1 %882 }
 0xbb7   : > { %1720 = vmatmul.mubr.msk.bf16.vlgmr.msra.gmra.mxu1 %vm459_vm2, %v883_v6  ;;  %1728 = vmatmul.mubr.msk.bf16.vlgmr.msra.gmra.mxu0 %vm459_vm2, %v883_v6 }
 0xbb8   : > { %1740 = vmatpush3.bf16.msra.mxu0 %v1988_v22  ;;  %1732 = vmatpush3.bf16.msra.mxu1 %v2020_v44 }
 0xbb9   : > { %1741 = vmatprep.subr.bf16.mxu0 %v1877_v23  ;;  %1733 = vmatprep.subr.bf16.mxu1 %v1877_v23 }
 0xbba   : > { %1735 = vmatprep.mubr.msk.bf16.mxu1 %vm1878_vm1, %v1877_v23  ;;  %1743 = vmatprep.mubr.msk.bf16.mxu0 %vm1878_vm1, %v1877_v23 }
 0xbbc   : > { %1742 = vmatpush3.bf16.msra.mxu0 %v1994_v24  ;;  %1734 = vmatpush3.bf16.msra.mxu1 %v2024_v45 }
 0xbbd   : > { %1755 = vmatprep.subr.bf16.mxu0 %v1877_v23  ;;  %1747 = vmatprep.subr.bf16.mxu1 %v1877_v23 }
 0xc77   : > { %v921_v9 = vpop.f32.mrf.mxu1  ;;  %v965_v10 = vpop.f32.mrf.mxu0 }
 0xc78   : > { %927 = vst [vmem:[#allocation2 + $0x10] sm:$0xff] %v921_v9  ;;  %v971_v11 = vadd.f32 %v965_v10, %v930_v8 }
 0xc79   : > { %v1721_v12 = vpop.f32.mrf.mxu1  ;;  %v1729_v13 = vpop.f32.mrf.mxu0 }
 0xc7a   : > { %1845 = vtanh.f32 %v971_v11  ;;  %v972_v19 = vmul.f32 0.5, %v971_v11 }
 0xc7b   : > { %v924_v14 = vpop.f32.mrf.mxu1  ;;  %v968_v15 = vpop.f32.mrf.mxu0 }
 0xc7c   : > { %1847 = vtanh.f32 %v972_v19 }
 0xc7d   : > { %v1722_v16 = vpop.f32.mrf.mxu1  ;;  %v1730_v17 = vpop.f32.mrf.mxu0 }
 0xc87   : > { %v1846_v18 = vpop.eup %1845 }
 0xc88   : > { %979 = vrot.lane.b32.xlu0 %v1846_v18, %s1880_s22 }
 0xc89   : > { %v1848_v20 = vpop.eup %1847 }
 0xc8a   : > { %v974_v21 = vadd.f32 1.0, %v1848_v20 }
 0xc8c   : > { %v975_v25 = vmul.f32 0.5, %v974_v21 }
 0xc8e   : > { %v977_v29 = vmul.f32 %v975_v25, %v873_v1 }
 0xcfa   : > { %v980_v27 = vpop.permute.xlu0 %979 }
 0xcfb   : > { %v982_v28 = vmul.f32 %v980_v27, %v975_v25 }
 0xcfd   : > { %984 = vrot.lane.b32.xlu1 %v982_v28, %s1880_s22 }
 0xd6f   : > { %v985_v30 = vpop.permute.xlu1 %984 }
 0xd70   : > { %v987_v31 = vadd.f32 %v985_v30, %v977_v29  ;;  %v1271_v29 = vld [vmem:[#allocation2 + $0x38] sm:$0xff] }
 0xd71   : > { %v1272_v30 = vadd.f32 %v2014_v26, %v1271_v29 }
 0xd72   : > { %1849 = vtanh.f32 %v987_v31 }
 0xd7f   : > { %v1850_v32 = vpop.eup %1849 }
 0xd80   : > { %990 = vrot.lane.b32.xlu0 %v1850_v32, %s1880_s22 }
 0xdf2   : > { %v991_v33 = vpop.permute.xlu0 %990 }
 0xdf3   : > { %v993_v34 = vmul.f32 %v991_v33, %v975_v25 }
 0xdf5   : > { %v994_v35 = vpack.c.bf16 %v993_v34, %v993_v34 }
 0xdf7   : > { %996 = vrot.lane.b32.xlu1 %v994_v35, %s1881_s26 }
 0xe69   : > { %v997_v36 = vpop.permute.xlu1 %996 }
 0xe6a   : > { %1736 = vmatmul.mubr.msk.bf16.vlgmr.msra.gmra.mxu1 %vm459_vm2, %v997_v36  ;;  %1744 = vmatmul.mubr.msk.bf16.vlgmr.msra.gmra.mxu0 %vm459_vm2, %v997_v36 }
 0xe6b   : > { %1756 = vmatpush3.bf16.msra.mxu0 %v1988_v22  ;;  %1748 = vmatpush3.bf16.msra.mxu1 %v2020_v44 }
 0xe6c   : > { %1757 = vmatprep.subr.bf16.mxu0 %v1877_v23  ;;  %1749 = vmatprep.subr.bf16.mxu1 %v1877_v23 }
 0xe6d   : > { %1751 = vmatprep.mubr.msk.bf16.mxu1 %vm1878_vm1, %v1877_v23  ;;  %1759 = vmatprep.mubr.msk.bf16.mxu0 %vm1878_vm1, %v1877_v23 }
 0xe6f   : > { %1758 = vmatpush3.bf16.msra.mxu0 %v1994_v24  ;;  %1750 = vmatpush3.bf16.msra.mxu1 %v2024_v45 }
 0xe70   : > { %1771 = vmatprep.subr.bf16.mxu0 %v1877_v23  ;;  %1763 = vmatprep.subr.bf16.mxu1 %v1877_v23 }
 0xf2a   : > { %v1035_v39 = vpop.f32.mrf.mxu1  ;;  %v1079_v40 = vpop.f32.mrf.mxu0 }
 0xf2b   : > { %1041 = vst [vmem:[#allocation2 + $0x8] sm:$0xff] %v1035_v39  ;;  %v1085_v41 = vadd.f32 %v1079_v40, %v1044_v38 }
 0xf2c   : > { %v1737_v42 = vpop.f32.mrf.mxu1  ;;  %v1745_v43 = vpop.f32.mrf.mxu0 }
 0xf2d   : > { %1851 = vtanh.f32 %v1085_v41  ;;  %v1086_v51 = vmul.f32 0.5, %v1085_v41 }
 0xf2e   : > { %v1038_v46 = vpop.f32.mrf.mxu1  ;;  %v1082_v47 = vpop.f32.mrf.mxu0 }
 0xf2f   : > { %1853 = vtanh.f32 %v1086_v51  ;;  %v1385_v51 = vld [vmem:[%s2189_s5 + $0x8] sm:$0xff] }
 0xf30   : > { %v1738_v48 = vpop.f32.mrf.mxu1  ;;  %v1746_v49 = vpop.f32.mrf.mxu0 }
 0xf31   : > { %v1387_v49 = vld [vmem:[%s2189_s5 + $0x18] sm:$0xff] }
 0xf3a   : > { %v1852_v50 = vpop.eup %1851 }
 0xf3b   : > { %1093 = vrot.lane.b32.xlu0 %v1852_v50, %s1880_s22  ;;  %v1386_v50 = vld [vmem:[%s2189_s5 + $0x10] sm:$0xff] }
 0xf3c   : > { %v1854_v52 = vpop.eup %1853 }
 0xf3d   : > { %v1088_v53 = vadd.f32 1.0, %v1854_v52  ;;  %v1384_v52 = vld [vmem:[%s2189_s5] sm:$0xff] }
 0xf3f   : > { %v1089_v54 = vmul.f32 0.5, %v1088_v53 }
 0xf41   : > { %v1091_v57 = vmul.f32 %v1089_v54, %v987_v31 }
 0xfad   : > { %v1094_v55 = vpop.permute.xlu0 %1093 }
 0xfae   : > { %v1096_v56 = vmul.f32 %v1094_v55, %v1089_v54 }
 0xfb0   : > { %1098 = vrot.lane.b32.xlu1 %v1096_v56, %s1880_s22 }
0x1022   : > { %v1099_v58 = vpop.permute.xlu1 %1098 }
0x1023   : > { %v1101_v59 = vadd.f32 %v1099_v58, %v1091_v57 }
0x1025   : > { %1855 = vtanh.f32 %v1101_v59 }
0x1032   : > { %v1856_v60 = vpop.eup %1855 }
0x1033   : > { %1104 = vrot.lane.b32.xlu0 %v1856_v60, %s1880_s22 }
0x10a5   : > { %v1105_v61 = vpop.permute.xlu0 %1104 }
0x10a6   : > { %v1107_v62 = vmul.f32 %v1105_v61, %v1089_v54 }
0x10a8   : > { %v1108_v63 = vpack.c.bf16 %v1107_v62, %v1107_v62 }
0x10aa   : > { %1110 = vrot.lane.b32.xlu1 %v1108_v63, %s1881_s26 }
0x111c   : > { %v1111_v0 = vpop.permute.xlu1 %1110 }
0x111d   : > { %1752 = vmatmul.mubr.msk.bf16.vlgmr.msra.gmra.mxu1 %vm459_vm2, %v1111_v0  ;;  %1760 = vmatmul.mubr.msk.bf16.vlgmr.msra.gmra.mxu0 %vm459_vm2, %v1111_v0 }
0x111e   : > { %1772 = vmatpush3.bf16.msra.mxu0 %v1988_v22  ;;  %1764 = vmatpush3.bf16.msra.mxu1 %v2020_v44  ;;  %v1157_v22 = vld [vmem:[#allocation2 + $0x28] sm:$0xff] }
0x111f   : > { %1773 = vmatprep.subr.bf16.mxu0 %v1877_v23  ;;  %1765 = vmatprep.subr.bf16.mxu1 %v1877_v23  ;;  %v1158_v1 = vadd.f32 %v2014_v26, %v1157_v22 }
0x1120   : > { %1767 = vmatprep.mubr.msk.bf16.mxu1 %vm1878_vm1, %v1877_v23  ;;  %1775 = vmatprep.mubr.msk.bf16.mxu0 %vm1878_vm1, %v1877_v23 }
0x1122   : > { %1774 = vmatpush3.bf16.msra.mxu0 %v1994_v24  ;;  %1766 = vmatpush3.bf16.msra.mxu1 %v2024_v45 }
0x1123   : > { %1787 = vmatprep.subr.mxu0 %v1877_v23  ;;  %1779 = vmatprep.subr.bf16.mxu1 %v1877_v23 }
0x11dd   : > { %v1149_v2 = vpop.f32.mrf.mxu1  ;;  %v1193_v3 = vpop.f32.mrf.mxu0 }
0x11de   : > { %1155 = vst [vmem:[#allocation2 + $0x20] sm:$0xff] %v1149_v2  ;;  %v1199_v4 = vadd.f32 %v1193_v3, %v1158_v1 }
0x11df   : > { %v1753_v5 = vpop.f32.mrf.mxu1  ;;  %v1761_v6 = vpop.f32.mrf.mxu0 }
0x11e0   : > { %1857 = vtanh.f32 %v1199_v4  ;;  %v1200_v11 = vmul.f32 0.5, %v1199_v4 }
0x11e1   : > { %v1152_v7 = vpop.f32.mrf.mxu1  ;;  %v1196_v8 = vpop.f32.mrf.mxu0 }
0x11e2   : > { %1859 = vtanh.f32 %v1200_v11 }
0x11e3   : > { %v1754_v9 = vpop.f32.mrf.mxu1  ;;  %v1762_v24 = vpop.f32.mrf.mxu0 }
0x11ed   : > { %v1858_v10 = vpop.eup %1857 }
0x11ee   : > { %1207 = vrot.lane.b32.xlu0 %v1858_v10, %s1880_s22 }
0x11ef   : > { %v1860_v12 = vpop.eup %1859 }
0x11f0   : > { %v1202_v13 = vadd.f32 1.0, %v1860_v12 }
0x11f2   : > { %v1203_v14 = vmul.f32 0.5, %v1202_v13 }
0x11f4   : > { %v1205_v17 = vmul.f32 %v1203_v14, %v1101_v59 }
0x1260   : > { %v1208_v15 = vpop.permute.xlu0 %1207 }
0x1261   : > { %v1210_v16 = vmul.f32 %v1208_v15, %v1203_v14 }
0x1263   : > { %1212 = vrot.lane.b32.xlu1 %v1210_v16, %s1880_s22 }
0x12d5   : > { %v1213_v18 = vpop.permute.xlu1 %1212 }
0x12d6   : > { %v1215_v19 = vadd.f32 %v1213_v18, %v1205_v17 }
0x12d8   : > { %1861 = vtanh.f32 %v1215_v19 }
0x12e5   : > { %v1862_v20 = vpop.eup %1861 }
0x12e6   : > { %1218 = vrot.lane.b32.xlu0 %v1862_v20, %s1880_s22 }
0x1358   : > { %v1219_v21 = vpop.permute.xlu0 %1218 }
0x1359   : > { %v1221_v25 = vmul.f32 %v1219_v21, %v1203_v14 }
0x135b   : > { %v1222_v27 = vpack.c.bf16 %v1221_v25, %v1221_v25 }
0x135d   : > { %1224 = vrot.lane.b32.xlu1 %v1222_v27, %s1881_s26 }
0x13cf   : > { %v1225_v28 = vpop.permute.xlu1 %1224 }
0x13d0   : > { %1768 = vmatmul.mubr.msk.bf16.vlgmr.msra.gmra.mxu1 %vm459_vm2, %v1225_v28  ;;  %1776 = vmatmul.mubr.msk.bf16.vlgmr.msra.gmra.mxu0 %vm459_vm2, %v1225_v28 }
0x13d1   : > { %1780 = vmatpush3.bf16.msra.mxu1 %v2020_v44  ;;  %1795 = vmatprep.mubr.msk.f32.mxu0 %vm1878_vm1, %v1877_v23 }
0x13d2   : > { %1781 = vmatprep.subr.bf16.mxu1 %v1877_v23  ;;  %1783 = vmatprep.mubr.msk.bf16.mxu1 %vm1878_vm1, %v1877_v23 }
0x13d3   : > { %1788 = vmatpush3.msra.mxu0 %v1387_v49 }
0x13d4   : > { %1789 = vmatprep.subr.mxu0 %v1877_v23 }
0x13d5   : > { %1782 = vmatpush3.bf16.msra.mxu1 %v2024_v45  ;;  %1790 = vmatpush3.msra.mxu0 %v1386_v50 }
0x13d6   : > { %1791 = vmatprep.subr.mxu0 %v1877_v23 }
0x13d7   : > { %1792 = vmatpush3.msra.mxu0 %v1385_v51 }
0x13d8   : > { %1793 = vmatprep.subr.mxu0 %v1877_v23  ;;  %v1582_v23 = vld [vmem:[%s2190_s6] ss:$0 sm:$0xff] }
0x13d9   : > { %1794 = vmatpush3.msra.mxu0 %v1384_v52 }
0x1490   : > { %v1263_v31 = vpop.f32.mrf.mxu1  ;;  %v1307_v32 = vpop.f32.mrf.mxu0 }
0x1491   : > { %1269 = vst [vmem:[#allocation2 + $0x28] sm:$0xff] %v1263_v31  ;;  %v1313_v33 = vadd.f32 %v1307_v32, %v1272_v30 }
0x1492   : > { %v1769_v34 = vpop.f32.mrf.mxu1  ;;  %v1777_v35 = vpop.f32.mrf.mxu0 }
0x1493   : > { %1863 = vtanh.f32 %v1313_v33  ;;  %v1314_v40 = vmul.f32 0.5, %v1313_v33 }
0x1494   : > { %v1266_v44 = vpop.f32.mrf.mxu1  ;;  %v1310_v36 = vpop.f32.mrf.mxu0 }
0x1495   : > { %1865 = vtanh.f32 %v1314_v40 }
0x1496   : > { %v1770_v37 = vpop.f32.mrf.mxu1  ;;  %v1778_v38 = vpop.f32.mrf.mxu0 }
0x14a0   : > { %v1864_v39 = vpop.eup %1863 }
0x14a1   : > { %1321 = vrot.lane.b32.xlu0 %v1864_v39, %s1880_s22 }
0x14a2   : > { %v1866_v45 = vpop.eup %1865 }
0x14a3   : > { %v1316_v41 = vadd.f32 1.0, %v1866_v45 }
0x14a5   : > { %v1317_v42 = vmul.f32 0.5, %v1316_v41 }
0x14a7   : > { %v1319_v46 = vmul.f32 %v1317_v42, %v1215_v19 }
0x1513   : > { %v1322_v26 = vpop.permute.xlu0 %1321 }
0x1514   : > { %v1324_v43 = vmul.f32 %v1322_v26, %v1317_v42 }
0x1516   : > { %1326 = vrot.lane.b32.xlu1 %v1324_v43, %s1880_s22 }
0x1588   : > { %v1327_v47 = vpop.permute.xlu1 %1326 }
0x1589   : > { %v1329_v48 = vadd.f32 %v1327_v47, %v1319_v46 }
0x158b   : > { %1867 = vtanh.f32 %v1329_v48 }
0x1598   : > { %v1868_v53 = vpop.eup %1867 }
0x1599   : > { %1332 = vrot.lane.b32.xlu0 %v1868_v53, %s1880_s22 }
0x160b   : > { %v1333_v54 = vpop.permute.xlu0 %1332 }
0x160c   : > { %v1335_v55 = vmul.f32 %v1333_v54, %v1317_v42 }
0x160e   : > { %v1336_v56 = vpack.c.bf16 %v1335_v55, %v1335_v55  ;;  %1396 = vrot.lane.b32.xlu0 %v1335_v55, %s1881_s26 }
0x1610   : > { %1338 = vrot.lane.b32.xlu1 %v1336_v56, %s1881_s26 }
0x1680   : > { %v1397_v57 = vpop.permute.xlu0 %1396 }
0x1681   : > { %1796 = vmatmul.mubr.msk.f32.vlgmr.msra.gmra.mxu0 %vm459_vm2, %v1397_v57 }
0x1682   : > { %v1339_v58 = vpop.permute.xlu1 %1338 }
0x1683   : > { %1784 = vmatmul.mubr.msk.bf16.vlgmr.msra.gmra.mxu1 %vm459_vm2, %v1339_v58 }
0x1741   : > { %v1466_v59 = vpop.f32.mrf.mxu0 }
0x1742   : > { %v1467_v60 = vadd.f32 %v1582_v23, %v1466_v59 }
0x1743   : > { %v1377_v61 = vpop.f32.mrf.mxu1  ;;  %v1797_v62 = vpop.f32.mrf.mxu0 }
0x1744   : > { %1470 = vst [vmem:[%s1951_s17] sm:$0xff] %v1467_v60  ;;  %1383 = vst [vmem:[#allocation2 + $0x38] sm:$0xff] %v1377_v61 }
0x1745   : > { %v1785_v63 = vpop.f32.mrf.mxu1 }
0x1747   : > { %v1380_v0 = vpop.f32.mrf.mxu1 }
0x1749   : > { %v1786_v22 = vpop.f32.mrf.mxu1 }
0x174a PF: > { %s17_s24 = sadd.s32 1, %s1875_s24  }
0x174b   : > { %p14_p5 = scmp.ge.s32.totalorder %s17_s24, 6  }
0x174d   :  { %16 = sbr.rel (!%p14_p5) target bundleno = 1 (0x1), region = 95 }

</bundles_post_ra>
